<compile_context>
chip_gen: v6e
topology: v6e:2x2x1
jax: 0.10.0
libtpu: 0.0.40
codegen_flags: <defaults>
</compile_context>

<pallas_src>
import functools

import jax
import jax.numpy as jnp
from jax import lax
from jax.experimental import pallas as pl
from jax.experimental.pallas import tpu as pltpu

EPS = 1e-5  # nn.BatchNorm1d default eps
HIGH = lax.Precision.HIGHEST
LANE = 128


# ----------------------------------------------------------------------------
# Fused head kernel:
#   out = relu(x1f @ W1 + x23 @ W2 + b_h) @ W_o + b_o
#   x1f: (N, K1) f32   x23: (N, K2) f32
#   W1 : (K1, 512) bf16   W2: (K2, 512) bf16   b_h: (1, 512) f32
#   W_o: (512, 128) f32 (zero-padded cols)   b_o: (1, 128) f32
#   out: (N, 128) f32  (caller slices to out_f)
# Everything fits comfortably in VMEM (~1.7 MiB), so a single un-gridded call
# is optimal: there is no compute to overlap the weight DMA with, and grid
# steps would only add per-step overhead.
# ----------------------------------------------------------------------------
def _fused_head_kernel(x1_ref, x23_ref, w1_ref, w2_ref, bh_ref, wo_ref, bo_ref, o_ref):
    # Activations arrive f32; cast to bf16 on the VPU (cheap) so the big matmul
    # is a single bf16 MXU pass with f32 accumulation.
    x1 = x1_ref[...].astype(jnp.bfloat16)
    x23 = x23_ref[...].astype(jnp.bfloat16)
    h = jnp.dot(x1, w1_ref[...], preferred_element_type=jnp.float32)
    h = h + jnp.dot(x23, w2_ref[...], preferred_element_type=jnp.float32)
    h = jnp.maximum(h + bh_ref[...], 0.0)  # Linear1 (+conv,+BN1) + ReLU
    # Linear2 (+BN2). Output is padded to 128 lanes -> unmasked vst.
    o_ref[...] = (
        jnp.dot(h, wo_ref[...], preferred_element_type=jnp.float32) + bo_ref[...]
    )


def fused_head(x1f, x23, w_h1, w_h2, b_h, w_o, b_o):
    N, k1 = x1f.shape
    k2 = x23.shape[1]
    hid = w_h1.shape[1]
    out_pad = w_o.shape[1]
    flops = 2 * N * (k1 + k2) * hid + 2 * N * hid * out_pad
    bytes_accessed = int(
        sum(a.size * a.dtype.itemsize for a in (x1f, x23, w_h1, w_h2, b_h, w_o, b_o))
        + N * out_pad * 4
    )
    vmem = pl.BlockSpec(memory_space=pltpu.MemorySpace.VMEM)
    return pl.pallas_call(
        _fused_head_kernel,
        out_shape=jax.ShapeDtypeStruct((N, out_pad), jnp.float32),
        in_specs=[vmem] * 7,
        out_specs=vmem,
        cost_estimate=pl.CostEstimate(
            flops=flops, transcendentals=0, bytes_accessed=bytes_accessed
        ),
    )(x1f, x23, w_h1, w_h2, b_h, w_o, b_o)


# ----------------------------------------------------------------------------
# One-time parameter folding (eval-mode algebraic collapse).
#   bn params are stacked rows: [gamma, beta, running_mean, running_var]
# ----------------------------------------------------------------------------
def fold_params(params, hs, ws):
    conv_w, conv_b, bn1, w1, b1l, bn2, w2, b2l = params
    cout, cin = conv_w.shape            # (2048, 1280)
    hid = w1.shape[0]                   # 512
    out_f = w2.shape[0]

    # BN1 (eval) as affine:  bn1(x) = x * s1 + t1
    s1 = bn1[0] * lax.rsqrt(bn1[3] + EPS)
    t1 = bn1[1] - bn1[2] * s1
    w1s = (w1 * s1[None, :]).T          # (in_f, hid)  -- BN1 folded into Linear1
    b1f = b1l + jnp.einsum("k,hk->h", t1, w1, precision=HIGH)

    # Fold the 1x1/stride-4 conv into the conv block of w1s.
    # Conv-output flatten order (NCHW) is (o, h, w); x1 rows are flattened in
    # (h, w, c) order in the wrapper, so Wf1[(h,w,c), :] = sum_o conv_w[o,c] *
    # w1s[(o,h,w), :].  (In the original torch module Hs=Ws=1, since cat along
    # dim=1 with 1x1 x2/x3 requires it; the general form is kept anyway.)
    nconv = cout * hs * ws
    w1s_conv = w1s[:nconv].reshape(cout, hs * ws, hid)
    w1s_rest = w1s[nconv:]              # rows for x2 then x3  (C2+C3, hid)
    wf1 = jnp.einsum("oc,ohd->hcd", conv_w, w1s_conv, precision=HIGH)
    wf1 = wf1.reshape(hs * ws * cin, hid)
    bf1 = jnp.einsum("o,ohd->d", conv_b, w1s_conv, precision=HIGH)
    b_h = b1f + bf1

    # BN2 (eval) folded into the final Linear; pad to a lane-dense 128 width.
    s2 = bn2[0] * lax.rsqrt(bn2[3] + EPS)
    t2 = bn2[1] - bn2[2] * s2
    w_o = (w2 * s2[None, :]).T                           # (hid, out_f)
    b_o = b2l + jnp.einsum("k,ok->o", t2, w2, precision=HIGH)
    out_pad = max(LANE, ((out_f + LANE - 1) // LANE) * LANE)
    w_o_pad = jnp.zeros((hid, out_pad), jnp.float32).at[:, :out_f].set(w_o)
    b_o_pad = jnp.zeros((1, out_pad), jnp.float32).at[:, :out_f].set(b_o)

    # bf16 for the big streamed weights (f32 MXU accumulation in the kernel).
    return (
        wf1.astype(jnp.bfloat16),                 # (hs*ws*cin, hid)  x1 block
        w1s_rest.astype(jnp.bfloat16),            # (C2+C3, hid)      x2|x3 block
        b_h.reshape(1, -1).astype(jnp.float32),   # (1, hid)
        w_o_pad,                                  # (hid, out_pad) f32
        b_o_pad,                                  # (1, out_pad) f32
    )


# ----------------------------------------------------------------------------
# FCN forward (Head part; backbone features are inputs)
# ----------------------------------------------------------------------------
@functools.partial(jax.jit, static_argnames=("out_f",))
def fcn_forward(x1, x2, x3, folded, out_f=1):
    w_h1, w_h2, b_h, w_o, b_o = folded
    N = x1.shape[0]
    # Conv2d(1280, 2048, 1, stride=[4,4], padding=0): the spatial part is a
    # strided subsample; the channel mixing is folded into w_h1.
    x1s = x1[:, :, ::4, ::4]
    x1f = jnp.transpose(x1s, (0, 2, 3, 1)).reshape(N, -1)   # (h, w, c) order
    x23 = jnp.concatenate([x2.reshape(N, -1), x3.reshape(N, -1)], axis=1)
    # TODO(synk): nn.Dropout(0.75) is stochastic in train mode; eval-mode identity here.
    out = fused_head(x1f, x23, w_h1, w_h2, b_h, w_o, b_o)
    return out[:, :out_f]


# pure-JAX reference implementing the original (unfolded) op sequence
def fcn_reference(x1, x2, x3, params):
    conv_w, conv_b, bn1, w1, b1l, bn2, w2, b2l = params
    N = x1.shape[0]
    x1s = x1[:, :, ::4, ::4]
    conv = (
        jnp.einsum("nchw,oc->nohw", x1s, conv_w, precision=HIGH)
        + conv_b[None, :, None, None]
    )
    feat = jnp.concatenate(
        [conv.reshape(N, -1), x2.reshape(N, -1), x3.reshape(N, -1)], axis=1
    )

    def bn(x, p):
        return (x - p[2]) * lax.rsqrt(p[3] + EPS) * p[0] + p[1]

    x = bn(feat, bn1)
    h = jnp.maximum(jnp.einsum("nk,hk->nh", x, w1, precision=HIGH) + b1l, 0.0)
    h = bn(h, bn2)
    return jnp.einsum("nh,oh->no", h, w2, precision=HIGH) + b2l


if __name__ == "__main__":
    key = jax.random.PRNGKey(0)
    ks = jax.random.split(key, 16)

    # small shapes consistent with Head: conv is hard-coded 1280 -> 2048
    N = 2
    C1, H1, W1 = 1280, 4, 4          # EfficientNet-style feature map (x1)
    C2, C3 = 64, 64                  # other backbone features (x2, x3), 1x1 spatial
    COUT, HID, OUT_F = 2048, 512, 1
    in_f = COUT * 1 * 1 + C2 + C3    # 2176 (flattened concat dim)

    # TODO(synk): model_res / model_ef / model_ex are external pretrained
    # backbones with no definition; their outputs are synthetic inputs here.
    x1 = jax.random.normal(ks[0], (N, C1, H1, W1), jnp.float32)
    x2 = jax.random.normal(ks[1], (N, C2, 1, 1), jnp.float32)
    x3 = jax.random.normal(ks[2], (N, C3, 1, 1), jnp.float32)

    # deterministic parameter init (PyTorch param shapes)
    conv_w = 0.02 * jax.random.normal(ks[3], (COUT, C1), jnp.float32)   # (2048,1280,1,1) squeezed
    conv_b = 0.02 * jax.random.normal(ks[4], (COUT,), jnp.float32)
    w1 = 0.02 * jax.random.normal(ks[5], (HID, in_f), jnp.float32)      # Linear(in_f, 512).weight
    b1l = 0.02 * jax.random.normal(ks[6], (HID,), jnp.float32)
    w2 = 0.02 * jax.random.normal(ks[7], (OUT_F, HID), jnp.float32)     # Linear(512, 1).weight
    b2l = 0.02 * jax.random.normal(ks[8], (OUT_F,), jnp.float32)
    bn1 = jnp.stack([
        1.0 + 0.1 * jax.random.normal(ks[9], (in_f,), jnp.float32),     # gamma
        0.1 * jax.random.normal(ks[10], (in_f,), jnp.float32),          # beta
        0.1 * jax.random.normal(ks[11], (in_f,), jnp.float32),          # running_mean
        0.5 + jax.random.uniform(ks[12], (in_f,), jnp.float32),         # running_var
    ])
    bn2 = jnp.stack([
        1.0 + 0.1 * jax.random.normal(ks[13], (HID,), jnp.float32),
        0.1 * jax.random.normal(ks[14], (HID,), jnp.float32),
        0.1 * jax.random.normal(ks[15], (HID,), jnp.float32),
        0.5 + jax.random.uniform(ks[9], (HID,), jnp.float32),
    ])

    params = (conv_w, conv_b, bn1, w1, b1l, bn2, w2, b2l)

    # one-time (offline) parameter folding
    hs, ws = x1[:, :, ::4, ::4].shape[2:]
    folded = jax.block_until_ready(fold_params(params, hs, ws))

    out = fcn_forward(x1, x2, x3, folded, out_f=OUT_F)
    out = jax.block_until_ready(out)
    ref = fcn_reference(x1, x2, x3, params)

    assert out.shape == (N, OUT_F), out.shape
    assert jnp.all(jnp.isfinite(out))
    # tolerance loosened deliberately: streamed weights/activations are bf16
    # (f32 MXU accumulation); observed error is ~1e-3, well inside 1e-2.
    assert jnp.allclose(out, ref, rtol=1e-2, atol=1e-2), (out, ref)
    print("KERNEL_OK")
</pallas_src>

<mosaic_0001>
module attributes {stable_mosaic.version = 11 : i64} {
  func.func @_fused_head_kernel(%arg0: memref<2x1280xf32, #tpu.memory_space<vmem>>, %arg1: memref<2x128xf32, #tpu.memory_space<vmem>>, %arg2: memref<1280x512xbf16, #tpu.memory_space<vmem>>, %arg3: memref<128x512xbf16, #tpu.memory_space<vmem>>, %arg4: memref<1x512xf32, #tpu.memory_space<vmem>>, %arg5: memref<512x128xf32, #tpu.memory_space<vmem>>, %arg6: memref<1x128xf32, #tpu.memory_space<vmem>>, %arg7: memref<2x128xf32, #tpu.memory_space<vmem>>) attributes {dimension_semantics = [], scalar_prefetch = 0 : i64, scratch_operands = 0 : i64, tpu.core_type = #tpu.core_type<tc>} {
    %c0 = arith.constant 0 : index
    %c0_0 = arith.constant 0 : index
    %0 = vector.load %arg0[%c0, %c0_0] : memref<2x1280xf32, #tpu.memory_space<vmem>>, vector<2x1280xf32>
    %1 = arith.truncf %0 : vector<2x1280xf32> to vector<2x1280xbf16>
    %c0_1 = arith.constant 0 : index
    %c0_2 = arith.constant 0 : index
    %2 = vector.load %arg1[%c0_1, %c0_2] : memref<2x128xf32, #tpu.memory_space<vmem>>, vector<2x128xf32>
    %3 = arith.truncf %2 : vector<2x128xf32> to vector<2x128xbf16>
    %c0_3 = arith.constant 0 : index
    %c0_4 = arith.constant 0 : index
    %4 = vector.load %arg2[%c0_3, %c0_4] : memref<1280x512xbf16, #tpu.memory_space<vmem>>, vector<1280x512xbf16>
    %cst = arith.constant dense<0.000000e+00> : vector<2x512xf32>
    %5 = tpu.matmul %1, %4, %cst {dimension_numbers = #tpu.dot_dimension_numbers<[1], [0], [0], [1], [0, 0, 1, 1], [], []>} : vector<2x1280xbf16>, vector<1280x512xbf16>, vector<2x512xf32> -> vector<2x512xf32>
    %c0_5 = arith.constant 0 : index
    %c0_6 = arith.constant 0 : index
    %6 = vector.load %arg3[%c0_5, %c0_6] : memref<128x512xbf16, #tpu.memory_space<vmem>>, vector<128x512xbf16>
    %cst_7 = arith.constant dense<0.000000e+00> : vector<2x512xf32>
    %7 = tpu.matmul %3, %6, %cst_7 {dimension_numbers = #tpu.dot_dimension_numbers<[1], [0], [0], [1], [0, 0, 1, 1], [], []>} : vector<2x128xbf16>, vector<128x512xbf16>, vector<2x512xf32> -> vector<2x512xf32>
    %8 = arith.addf %5, %7 : vector<2x512xf32>
    %c0_8 = arith.constant 0 : index
    %c0_9 = arith.constant 0 : index
    %9 = vector.load %arg4[%c0_8, %c0_9] : memref<1x512xf32, #tpu.memory_space<vmem>>, vector<1x512xf32>
    %10 = vector.broadcast %9 : vector<1x512xf32> to vector<2x512xf32>
    %11 = arith.addf %8, %10 : vector<2x512xf32>
    %cst_10 = arith.constant 0.000000e+00 : f32
    %12 = vector.broadcast %cst_10 : f32 to vector<2x512xf32>
    %13 = arith.maximumf %11, %12 : vector<2x512xf32>
    %c0_11 = arith.constant 0 : index
    %c0_12 = arith.constant 0 : index
    %14 = vector.load %arg5[%c0_11, %c0_12] : memref<512x128xf32, #tpu.memory_space<vmem>>, vector<512x128xf32>
    %cst_13 = arith.constant dense<0.000000e+00> : vector<2x128xf32>
    %15 = tpu.matmul %13, %14, %cst_13 {dimension_numbers = #tpu.dot_dimension_numbers<[1], [0], [0], [1], [0, 0, 1, 1], [], []>} : vector<2x512xf32>, vector<512x128xf32>, vector<2x128xf32> -> vector<2x128xf32>
    %c0_14 = arith.constant 0 : index
    %c0_15 = arith.constant 0 : index
    %16 = vector.load %arg6[%c0_14, %c0_15] : memref<1x128xf32, #tpu.memory_space<vmem>>, vector<1x128xf32>
    %17 = vector.broadcast %16 : vector<1x128xf32> to vector<2x128xf32>
    %18 = arith.addf %15, %17 : vector<2x128xf32>
    %c0_16 = arith.constant 0 : index
    %c0_17 = arith.constant 0 : index
    %19 = vector.load %arg7[%c0_16, %c0_17] : memref<2x128xf32, #tpu.memory_space<vmem>>, vector<2x128xf32>
    tpu.vector_store %arg7[%c0_16, %c0_17], %18 {strides = array<i32>} : memref<2x128xf32, #tpu.memory_space<vmem>>, vector<2x128xf32>,
    return
  }
}

</mosaic_0001>

<bundles_post_ra>
// kernel: fcn_forward.1
= control target key start
LH: loop header
LB: loop body
LE: loop exit
PB: predicated region body
PF: predicated region fallthrough
CT: control target
= control target key end

     0   :  { %12 = vsyncpa [#allocation3], 0  ;;  %s4282_s0 = inlined_call_operand.vmem [shape: f32[2,1280], index: 0, kind: input, shape index: {}]   ;;  %s4283_s1 = inlined_call_operand.vmem [shape: f32[2,128], index: 1, kind: input, shape index: {}]   ;;  %s4284_s2 = inlined_call_operand.hbm [shape: bf16[1280,512], index: 2, kind: input, shape index: {}]   ;;  %s4285_s3 = inlined_call_operand.hbm [shape: bf16[128,512], index: 3, kind: input, shape index: {}]   ;;  %s4286_s4 = inlined_call_operand.hbm [shape: f32[1,512], index: 4, kind: input, shape index: {}]   ;;  %s4287_s5 = inlined_call_operand.hbm [shape: f32[512,128], index: 5, kind: input, shape index: {}]   ;;  %s4288_s6 = inlined_call_operand.hbm [shape: f32[1,128], index: 6, kind: input, shape index: {}]   ;;  %s4289_s7 = inlined_call_operand.vmem [shape: f32[2,128], index: 7, kind: output, shape index: {}]  }
   0x1   :  { %13 = vsyncpa [#allocation5], 0 }
   0x2   :  { %14 = vsyncpa [#allocation8], 0  ;;  %s4085_s24 = smov [#allocation4]   ;;  %s4086_s26 = smov [#allocation7]  }
   0x3   :  { %s36_s25 = sshll.u32 %s4085_s24, 4  ;;  %s58_s27 = sshll.u32 %s4086_s26, 4  ;;  %s37_s25 = int_to_ptr.vmem [resolvable:$true] %s36_s25  ;;  %s59_s27 = int_to_ptr.vmem [resolvable:$true] %s58_s27 }
   0x4   :  { %s3987_s28 = scalar_lea.vmem %s37_s25, 4096  ;;  %p3992_p1 = scmp.lt.s32.totalorder %s37_s25, %s37_s25 }
   0x5   :  { %p3988_p0 = scmp.ne.s32.totalorder %s37_s25, %s3987_s28  ;;  %p3993_p2 = scmp.lt.s32.totalorder %s3987_s28, %s3987_s28 }
   0x7   :  { %p3994_p3 = por %p3993_p2, %p3992_p1 }
   0x9   :  { %p3995_p4 = pnand %p3994_p3, %p3988_p0 }
   0xb   :  { %3998 = shalt.err (!%p3995_p4)
}
   0xc   :  { %s4087_s29 = smov 256   ;;  %s4088_s30 = smov 16  }
   0xd   :  { %42 = dma.hbm_to_vmem [thread:$0]  %s4285_s3, 4096, %s37_s25, [#allocation5], %s4087_s29, %s4087_s29, %s4088_s30  }
   0xe   :  { %s4007_s10 = scalar_lea.vmem %s59_s27, 8192  ;;  %p4012_p6 = scmp.lt.s32.totalorder %s59_s27, %s59_s27 }
   0xf   :  { %p4008_p5 = scmp.ne.s32.totalorder %s59_s27, %s4007_s10  ;;  %p4013_p7 = scmp.lt.s32.totalorder %s4007_s10, %s4007_s10 }
  0x11   :  { %p4014_p8 = por %p4013_p7, %p4012_p6 }
  0x13   :  { %p4015_p9 = pnand %p4014_p8, %p4008_p5 }
  0x15   :  { %4018 = shalt.err (!%p4015_p9)
}
  0x16   :  { %s4089_s11 = smov 128   ;;  %s4090_s12 = smov 8  }
  0x17   :  { %64 = dma.hbm_to_vmem [thread:$0]  %s4287_s5, 8192, %s59_s27, [#allocation8], %s4089_s11, %s4089_s11, %s4090_s12  }
  0x18   :  { %s4091_s15 = smov [#allocation2]   ;;  %s4092_s17 = smov [#allocation6]  }
  0x19   :  { %s24_s16 = sshll.u32 %s4091_s15, 4  ;;  %s49_s18 = sshll.u32 %s4092_s17, 4  ;;  %s25_s16 = int_to_ptr.vmem [resolvable:$true] %s24_s16  ;;  %s50_s18 = int_to_ptr.vmem [resolvable:$true] %s49_s18 }
  0x1a   :  { %s4027_s3 = scalar_lea.vmem %s25_s16, 40960  ;;  %p4032_p11 = scmp.lt.s32.totalorder %s25_s16, %s25_s16 }
  0x1b   :  { %p4028_p10 = scmp.ne.s32.totalorder %s25_s16, %s4027_s3  ;;  %p4033_p12 = scmp.lt.s32.totalorder %s4027_s3, %s4027_s3 }
  0x1d   :  { %p4034_p13 = por %p4033_p12, %p4032_p11 }
  0x1f   :  { %p4035_p0 = pnand %p4034_p13, %p4028_p10 }
  0x21   :  { %4038 = shalt.err (!%p4035_p0)
}
  0x22   :  { %30 = dma.hbm_to_vmem [thread:$0]  %s4284_s2, 40960, %s25_s16, [#allocation3], %s4087_s29, %s4087_s29, %s4088_s30  }
  0x23   :  { %s4047_s21 = scalar_lea.vmem %s50_s18, 64  ;;  %p4052_p2 = scmp.lt.s32.totalorder %s50_s18, %s50_s18 }
  0x24   :  { %p4048_p1 = scmp.ne.s32.totalorder %s50_s18, %s4047_s21  ;;  %p4053_p3 = scmp.lt.s32.totalorder %s4047_s21, %s4047_s21 }
  0x26   :  { %p4054_p4 = por %p4053_p3, %p4052_p2 }
  0x28   :  { %p4055_p5 = pnand %p4054_p4, %p4048_p1 }
  0x2a   :  { %4058 = shalt.err (!%p4055_p5)
}
  0x2b   :  { %52 = dma.hbm_to_vmem [thread:$0]  %s4286_s4, 64, %s50_s18, [#allocation5]  }
  0x2c   :  { %s4093_s23 = smov [#allocation9]  }
  0x2d   :  { %s71_s24 = sshll.u32 %s4093_s23, 4  ;;  %s72_s24 = int_to_ptr.vmem [resolvable:$true] %s71_s24 }
  0x2e   :  { %s4067_s25 = scalar_lea.vmem %s72_s24, 16  ;;  %s4071_s26 = scalar_lea.vmem %s72_s24, 32 }
  0x2f   :  { %p4068_p6 = scmp.ne.s32.totalorder %s72_s24, %s4067_s25  ;;  %p4072_p7 = scmp.lt.s32.totalorder %s72_s24, %s72_s24 }
  0x30   :  { %p4073_p8 = scmp.lt.s32.totalorder %s4071_s26, %s4067_s25 }
  0x32   :  { %p4074_p9 = por %p4073_p8, %p4072_p7 }
  0x34   :  { %p4075_p10 = pnand %p4074_p9, %p4068_p6 }
  0x36   :  { %4078 = shalt.err (!%p4075_p10)
}
  0x37   :  { %74 = dma.hbm_to_vmem [thread:$0]  %s4288_s6, 16, %s72_s24, [#allocation8]  }
  0x38   :  { %4079 = dma.done.wait [#allocation3], 40960  }
  0x39   :  { %4080 = vsyncadd [#allocation3], 4294926336 }
  0x3a   :  { %4081 = dma.done.wait [#allocation5], 4160  }
  0x3b   :  { %4082 = vsyncadd [#allocation5], 4294963136 }
  0x3c   :  { %4083 = dma.done.wait [#allocation8], 8208  }
  0x3d   :  { %4084 = vsyncadd [#allocation8], 4294959088  ;;  %v4094_v0 = vmov 0   ;;  %v3449_v1 = vld [vmem:[#allocation4 + $0xe4] ss:$16 sps:$4 sm:$0xff]   ;;  %v101_v63 = vlaneseq }
  0x3e   :  { %705 = vmatprep.mubr.bf16.mxu0 %v4094_v0  ;;  %746 = vmatprep.mubr.bf16.mxu1 %v4094_v0  ;;  %v3451_v2 = vld [vmem:[#allocation4 + $0xec] ss:$16 sps:$4 sm:$0xff]   ;;  %v3453_v3 = vld [vmem:[#allocation4 + $0xe0] ss:$16 sps:$4 sm:$0xff]   ;;  %v3454_v4 = vld [vmem:[#allocation4 + $0xe8] ss:$16 sps:$4 sm:$0xff]  }
  0x3f   :  { %673 = vmatprep.subr.bf16.mxu0 %v3449_v1  ;;  %714 = vmatprep.subr.bf16.mxu1 %v3451_v2  ;;  %v3455_v5 = vld [vmem:[#allocation4 + $0xc4] ss:$16 sps:$4 sm:$0xff]   ;;  %v3457_v6 = vld [vmem:[#allocation4 + $0xcc] ss:$16 sps:$4 sm:$0xff]   ;;  %v3459_v7 = vld [vmem:[#allocation4 + $0xc0] ss:$16 sps:$4 sm:$0xff]  }
  0x40   :  { %674 = vmatpush1.bf16.msra.mxu0 %v3453_v3  ;;  %715 = vmatpush1.bf16.msra.mxu1 %v3454_v4  ;;  %v3460_v8 = vld [vmem:[#allocation4 + $0xc8] ss:$16 sps:$4 sm:$0xff]   ;;  %v3461_v9 = vld [vmem:[#allocation4 + $0xa4] ss:$16 sps:$4 sm:$0xff]   ;;  %v3463_v10 = vld [vmem:[#allocation4 + $0xac] ss:$16 sps:$4 sm:$0xff]  }
  0x41   :  { %675 = vmatprep.subr.bf16.mxu0 %v3455_v5  ;;  %716 = vmatprep.subr.bf16.mxu1 %v3457_v6  ;;  %v3465_v11 = vld [vmem:[#allocation4 + $0xa0] ss:$16 sps:$4 sm:$0xff]   ;;  %v3466_v12 = vld [vmem:[#allocation4 + $0xa8] ss:$16 sps:$4 sm:$0xff]   ;;  %v3467_v13 = vld [vmem:[#allocation4 + $0x84] ss:$16 sps:$4 sm:$0xff]  }
  0x42   :  { %v3469_v14 = vld [vmem:[#allocation4 + $0x8c] ss:$16 sps:$4 sm:$0xff]   ;;  %v3471_v15 = vld [vmem:[#allocation4 + $0x80] ss:$16 sps:$4 sm:$0xff]   ;;  %v3472_v16 = vld [vmem:[#allocation4 + $0x88] ss:$16 sps:$4 sm:$0xff]  }
  0x43   :  { %v3473_v17 = vld [vmem:[#allocation4 + $0x64] ss:$16 sps:$4 sm:$0xff]   ;;  %v3475_v18 = vld [vmem:[#allocation4 + $0x6c] ss:$16 sps:$4 sm:$0xff]   ;;  %v3477_v19 = vld [vmem:[#allocation4 + $0x60] ss:$16 sps:$4 sm:$0xff]  }
  0x44   :  { %676 = vmatpush1.bf16.msra.mxu0 %v3459_v7  ;;  %717 = vmatpush1.bf16.msra.mxu1 %v3460_v8  ;;  %v3478_v20 = vld [vmem:[#allocation4 + $0x68] ss:$16 sps:$4 sm:$0xff]   ;;  %v3479_v21 = vld [vmem:[#allocation4 + $0x44] ss:$16 sps:$4 sm:$0xff]   ;;  %v3481_v22 = vld [vmem:[#allocation4 + $0x4c] ss:$16 sps:$4 sm:$0xff]  }
  0x45   :  { %677 = vmatprep.subr.bf16.mxu0 %v3461_v9  ;;  %718 = vmatprep.subr.bf16.mxu1 %v3463_v10  ;;  %v3483_v23 = vld [vmem:[#allocation4 + $0x40] ss:$16 sps:$4 sm:$0xff]   ;;  %v3484_v24 = vld [vmem:[#allocation4 + $0x48] ss:$16 sps:$4 sm:$0xff]   ;;  %v3485_v25 = vld [vmem:[#allocation4 + $0x24] ss:$16 sps:$4 sm:$0xff]  }
  0x46   :  { %v3487_v26 = vld [vmem:[#allocation4 + $0x2c] ss:$16 sps:$4 sm:$0xff]   ;;  %v3489_v27 = vld [vmem:[#allocation4 + $0x20] ss:$16 sps:$4 sm:$0xff]   ;;  %v3490_v28 = vld [vmem:[#allocation4 + $0x28] ss:$16 sps:$4 sm:$0xff]  }
  0x47   :  { %v3491_v29 = vld [vmem:[#allocation4 + $0x4] ss:$16 sps:$4 sm:$0xff]   ;;  %v3493_v30 = vld [vmem:[#allocation4 + $0xc] ss:$16 sps:$4 sm:$0xff]   ;;  %v3495_v31 = vld [vmem:[#allocation4] ss:$16 sps:$4 sm:$0xff]  }
  0x48   :  { %678 = vmatpush1.bf16.msra.mxu0 %v3465_v11  ;;  %719 = vmatpush1.bf16.msra.mxu1 %v3466_v12  ;;  %v3496_v32 = vld [vmem:[#allocation4 + $0x8] ss:$16 sps:$4 sm:$0xff]   ;;  %v159_v33 = vld [vmem:[%s4283_s1] sm:$0x3]  ;;  %v3499_v34 = vld [vmem:[#allocation2 + $0xe4] ss:$16 sps:$4 sm:$0xff]  }
  0x49   :  { %679 = vmatprep.subr.bf16.mxu0 %v3467_v13  ;;  %720 = vmatprep.subr.bf16.mxu1 %v3469_v14  ;;  %v3502_v35 = vld [vmem:[#allocation2 + $0x2e4] ss:$16 sps:$4 sm:$0xff]   ;;  %v160_v36 = vpack.c.bf16 %v159_v33, %v159_v33  ;;  %v3497_v37 = vld [vmem:[#allocation2 + $0xe0] ss:$16 sps:$4 sm:$0xff]   ;;  %v4095_v61 = vmov 1983009808  }
  0x4a   :  { %v3500_v38 = vld [vmem:[#allocation2 + $0x2e0] ss:$16 sps:$4 sm:$0xff]   ;;  %v3505_v39 = vld [vmem:[#allocation2 + $0xc4] ss:$16 sps:$4 sm:$0xff]   ;;  %v99_v62 = vunpack.c.l.s4 %v4095_v61  ;;  %v4154_v5 = vshrl.u32 %v101_v63, 7 }
  0x4b   :  { %v3508_v40 = vld [vmem:[#allocation2 + $0x2c4] ss:$16 sps:$4 sm:$0xff]   ;;  %v3503_v41 = vld [vmem:[#allocation2 + $0xc0] ss:$16 sps:$4 sm:$0xff]  }
  0x4c   :  { %680 = vmatpush1.bf16.msra.mxu0 %v3471_v15  ;;  %721 = vmatpush1.bf16.msra.mxu1 %v3472_v16  ;;  %v3506_v42 = vld [vmem:[#allocation2 + $0x2c0] ss:$16 sps:$4 sm:$0xff]   ;;  %v3511_v43 = vld [vmem:[#allocation2 + $0xa4] ss:$16 sps:$4 sm:$0xff]   ;;  %v100_v4 = vunpack.c.0.s8 %v99_v62 }
  0x4d   :  { %681 = vmatprep.subr.bf16.mxu0 %v3473_v17  ;;  %722 = vmatprep.subr.bf16.mxu1 %v3475_v18  ;;  %v3514_v44 = vld [vmem:[#allocation2 + $0x2a4] ss:$16 sps:$4 sm:$0xff]   ;;  %v3509_v45 = vld [vmem:[#allocation2 + $0xa0] ss:$16 sps:$4 sm:$0xff]  }
  0x4e   :  { %v3512_v46 = vld [vmem:[#allocation2 + $0x2a0] ss:$16 sps:$4 sm:$0xff]   ;;  %v3517_v47 = vld [vmem:[#allocation2 + $0x84] ss:$16 sps:$4 sm:$0xff]   ;;  %v4157_v10 = vsub.s32 %v100_v4, %v4154_v5 }
  0x4f   :  { %v3520_v48 = vld [vmem:[#allocation2 + $0x284] ss:$16 sps:$4 sm:$0xff]   ;;  %v3515_v49 = vld [vmem:[#allocation2 + $0x80] ss:$16 sps:$4 sm:$0xff]  }
  0x50   :  { %682 = vmatpush1.bf16.msra.mxu0 %v3477_v19  ;;  %723 = vmatpush1.bf16.msra.mxu1 %v3478_v20  ;;  %v3518_v50 = vld [vmem:[#allocation2 + $0x280] ss:$16 sps:$4 sm:$0xff]   ;;  %v3523_v51 = vld [vmem:[#allocation2 + $0x64] ss:$16 sps:$4 sm:$0xff]  }
  0x51   :  { %683 = vmatprep.subr.bf16.mxu0 %v3479_v21  ;;  %724 = vmatprep.subr.bf16.mxu1 %v3481_v22  ;;  %v3526_v52 = vld [vmem:[#allocation2 + $0x264] ss:$16 sps:$4 sm:$0xff]   ;;  %v3521_v53 = vld [vmem:[#allocation2 + $0x60] ss:$16 sps:$4 sm:$0xff]  }
  0x52   :  { %v3524_v54 = vld [vmem:[#allocation2 + $0x260] ss:$16 sps:$4 sm:$0xff]   ;;  %v3529_v55 = vld [vmem:[#allocation2 + $0x44] ss:$16 sps:$4 sm:$0xff]  }
  0x53   :  { %v3532_v56 = vld [vmem:[#allocation2 + $0x244] ss:$16 sps:$4 sm:$0xff]   ;;  %v3527_v57 = vld [vmem:[#allocation2 + $0x40] ss:$16 sps:$4 sm:$0xff]  }
  0x54   :  { %684 = vmatpush1.bf16.msra.mxu0 %v3483_v23  ;;  %725 = vmatpush1.bf16.msra.mxu1 %v3484_v24  ;;  %v3530_v58 = vld [vmem:[#allocation2 + $0x240] ss:$16 sps:$4 sm:$0xff]   ;;  %v3535_v59 = vld [vmem:[#allocation2 + $0x24] ss:$16 sps:$4 sm:$0xff]  }
  0x55   :  { %685 = vmatprep.subr.bf16.mxu0 %v3485_v25  ;;  %726 = vmatprep.subr.bf16.mxu1 %v3487_v26  ;;  %v3538_v60 = vld [vmem:[#allocation2 + $0x224] ss:$16 sps:$4 sm:$0xff]   ;;  %v3533_v0 = vld [vmem:[#allocation2 + $0x20] ss:$16 sps:$4 sm:$0xff]  }
  0x56   :  { %v3536_v1 = vld [vmem:[#allocation2 + $0x220] ss:$16 sps:$4 sm:$0xff]   ;;  %v3541_v2 = vld [vmem:[#allocation2 + $0x4] ss:$16 sps:$4 sm:$0xff]  }
  0x57   :  { %v3544_v3 = vld [vmem:[#allocation2 + $0x204] ss:$16 sps:$4 sm:$0xff]   ;;  %v3539_v6 = vld [vmem:[#allocation2] ss:$16 sps:$4 sm:$0xff]  }
  0x58   :  { %686 = vmatpush1.bf16.msra.mxu0 %v3489_v27  ;;  %727 = vmatpush1.bf16.msra.mxu1 %v3490_v28  ;;  %v3542_v7 = vld [vmem:[#allocation2 + $0x200] ss:$16 sps:$4 sm:$0xff]   ;;  %v3547_v8 = vld [vmem:[#allocation2 + $0x1e4] ss:$16 sps:$4 sm:$0xff]  }
  0x59   :  { %687 = vmatprep.subr.bf16.mxu0 %v3491_v29  ;;  %728 = vmatprep.subr.bf16.mxu1 %v3493_v30  ;;  %v3550_v9 = vld [vmem:[#allocation2 + $0x3e4] ss:$16 sps:$4 sm:$0xff]   ;;  %v3545_v11 = vld [vmem:[#allocation2 + $0x1e0] ss:$16 sps:$4 sm:$0xff]  }
  0x5a   :  { %v3548_v12 = vld [vmem:[#allocation2 + $0x3e0] ss:$16 sps:$4 sm:$0xff]   ;;  %v3553_v14 = vld [vmem:[#allocation2 + $0x1c4] ss:$16 sps:$4 sm:$0xff]  }
  0x5b   :  { %v91_v13 = vld [vmem:[%s4282_s0] sm:$0xff] }
  0x5c   :  { %688 = vmatpush1.bf16.msra.mxu0 %v3495_v31  ;;  %729 = vmatpush1.bf16.msra.mxu1 %v3496_v32  ;;  %v3556_v15 = vld [vmem:[#allocation2 + $0x3c4] ss:$16 sps:$4 sm:$0xff]   ;;  %v4163_v16 = vrot.slane %v91_v13, %v4157_v10  ;;  %v97_v17 = vcombine.high %v91_v13, %v91_v13  ;;  %v3551_v20 = vld [vmem:[#allocation2 + $0x1c0] ss:$16 sps:$4 sm:$0xff]  }
  0x5d   :  { %2355 = vmatprep.subr.bf16.mxu0 %v3499_v34  ;;  %2396 = vmatprep.subr.bf16.mxu1 %v3502_v35  ;;  %v3554_v21 = vld [vmem:[#allocation2 + $0x3c0] ss:$16 sps:$4 sm:$0xff]   ;;  %v3559_v22 = vld [vmem:[#allocation2 + $0x1a4] ss:$16 sps:$4 sm:$0xff]  }
  0x5e   :  { %v112_v18 = vcombine.high %v4163_v16, %v4163_v16  ;;  %v4168_v19 = vrot.slane %v97_v17, %v4157_v10  ;;  %v3562_v23 = vld [vmem:[#allocation2 + $0x3a4] ss:$16 sps:$4 sm:$0xff]   ;;  %v3557_v27 = vld [vmem:[#allocation2 + $0x1a0] ss:$16 sps:$4 sm:$0xff]  }
  0x5f   :  { %706 = vmatmul.mubr.bf16.vlgmr.msra.gmra.mxu0 %v160_v36  ;;  %747 = vmatmul.mubr.bf16.vlgmr.msra.gmra.mxu1 %v160_v36  ;;  %v3560_v28 = vld [vmem:[#allocation2 + $0x3a0] ss:$16 sps:$4 sm:$0xff]   ;;  %v3565_v29 = vld [vmem:[#allocation2 + $0x184] ss:$16 sps:$4 sm:$0xff]  }
  0x60   :  { %2356 = vmatpush1.bf16.msra.mxu0 %v3497_v37  ;;  %2397 = vmatpush1.bf16.msra.mxu1 %v3500_v38  ;;  %v4170_v24 = vpack.c.bf16 %v112_v18, %v112_v18  ;;  %v113_v25 = vcombine.high %v4168_v19, %v4168_v19  ;;  %v3568_v30 = vld [vmem:[#allocation2 + $0x384] ss:$16 sps:$4 sm:$0xff]   ;;  %v3563_v31 = vld [vmem:[#allocation2 + $0x180] ss:$16 sps:$4 sm:$0xff]  }
  0x61   :  { %2357 = vmatprep.subr.bf16.mxu0 %v3505_v39  ;;  %2398 = vmatprep.subr.bf16.mxu1 %v3508_v40  ;;  %v3566_v32 = vld [vmem:[#allocation2 + $0x380] ss:$16 sps:$4 sm:$0xff]   ;;  %v3571_v33 = vld [vmem:[#allocation2 + $0x164] ss:$16 sps:$4 sm:$0xff]  }
  0x62   :  { %2387 = vmatprep.mubr.bf16.mxu0 %v4170_v24  ;;  %v4175_v26 = vpack.c.bf16 %v113_v25, %v113_v25  ;;  %v3574_v34 = vld [vmem:[#allocation2 + $0x364] ss:$16 sps:$4 sm:$0xff]   ;;  %v3569_v35 = vld [vmem:[#allocation2 + $0x160] ss:$16 sps:$4 sm:$0xff]  }
  0x63   :  { %v3572_v36 = vld [vmem:[#allocation2 + $0x360] ss:$16 sps:$4 sm:$0xff]   ;;  %v3577_v37 = vld [vmem:[#allocation2 + $0x144] ss:$16 sps:$4 sm:$0xff]  }
  0x64   :  { %2358 = vmatpush1.bf16.msra.mxu0 %v3503_v41  ;;  %2399 = vmatpush1.bf16.msra.mxu1 %v3506_v42  ;;  %v3580_v38 = vld [vmem:[#allocation2 + $0x344] ss:$16 sps:$4 sm:$0xff]   ;;  %v3575_v39 = vld [vmem:[#allocation2 + $0x140] ss:$16 sps:$4 sm:$0xff]  }
  0x65   :  { %2359 = vmatprep.subr.bf16.mxu0 %v3511_v43  ;;  %2400 = vmatprep.subr.bf16.mxu1 %v3514_v44  ;;  %v3578_v40 = vld [vmem:[#allocation2 + $0x340] ss:$16 sps:$4 sm:$0xff]   ;;  %v3583_v41 = vld [vmem:[#allocation2 + $0x124] ss:$16 sps:$4 sm:$0xff]  }
  0x66   :  { %2428 = vmatprep.mubr.bf16.mxu1 %v4175_v26  ;;  %v3586_v42 = vld [vmem:[#allocation2 + $0x324] ss:$16 sps:$4 sm:$0xff]   ;;  %v3581_v43 = vld [vmem:[#allocation2 + $0x120] ss:$16 sps:$4 sm:$0xff]  }
  0x67   :  { %v3584_v44 = vld [vmem:[#allocation2 + $0x320] ss:$16 sps:$4 sm:$0xff]   ;;  %v3614_v63 = vld [vmem:[#allocation2 + $0x484] ss:$16 sps:$4 sm:$0xff]  }
  0x68   :  { %2360 = vmatpush1.bf16.msra.mxu0 %v3509_v45  ;;  %2401 = vmatpush1.bf16.msra.mxu1 %v3512_v46  ;;  %v3589_v45 = vld [vmem:[#allocation2 + $0x104] ss:$16 sps:$4 sm:$0xff]   ;;  %v3606_v61 = vld [vmem:[#allocation2 + $0x4a0] ss:$16 sps:$4 sm:$0xff]  }
  0x69   :  { %2361 = vmatprep.subr.bf16.mxu0 %v3517_v47  ;;  %2402 = vmatprep.subr.bf16.mxu1 %v3520_v48  ;;  %v3592_v46 = vld [vmem:[#allocation2 + $0x304] ss:$16 sps:$4 sm:$0xff]   ;;  %v3587_v47 = vld [vmem:[#allocation2 + $0x100] ss:$16 sps:$4 sm:$0xff]  }
  0x6a   :  { %v3590_v48 = vld [vmem:[#allocation2 + $0x300] ss:$16 sps:$4 sm:$0xff]   ;;  %v3620_v4 = vld [vmem:[#allocation2 + $0x464] ss:$16 sps:$4 sm:$0xff]  }
  0x6b   :  { %v3609_v62 = vld [vmem:[#allocation2 + $0x6a0] ss:$16 sps:$4 sm:$0xff]   ;;  %v3629_v17 = vld [vmem:[#allocation2 + $0x644] ss:$16 sps:$4 sm:$0xff]  }
  0x6c   :  { %2362 = vmatpush1.bf16.msra.mxu0 %v3515_v49  ;;  %2403 = vmatpush1.bf16.msra.mxu1 %v3518_v50  ;;  %v3596_v49 = vld [vmem:[#allocation2 + $0x4e4] ss:$16 sps:$4 sm:$0xff]   ;;  %v3621_v13 = vld [vmem:[#allocation2 + $0x660] ss:$16 sps:$4 sm:$0xff]  }
  0x6d   :  { %2363 = vmatprep.subr.bf16.mxu0 %v3523_v51  ;;  %2404 = vmatprep.subr.bf16.mxu1 %v3526_v52  ;;  %v3599_v50 = vld [vmem:[#allocation2 + $0x6e4] ss:$16 sps:$4 sm:$0xff]   ;;  %v4180_v51 = vpack.c.bf16 %v4163_v16, %v4163_v16  ;;  %v4184_v52 = vpack.c.bf16 %v4168_v19, %v4168_v19  ;;  %v3624_v19 = vld [vmem:[#allocation2 + $0x440] ss:$16 sps:$4 sm:$0xff]  }
  0x6e   :  { %v3638_v25 = vld [vmem:[#allocation2 + $0x404] ss:$16 sps:$4 sm:$0xff]  }
  0x70   :  { %2364 = vmatpush1.bf16.msra.mxu0 %v3521_v53  ;;  %2405 = vmatpush1.bf16.msra.mxu1 %v3524_v54  ;;  %v3594_v53 = vld [vmem:[#allocation2 + $0x4e0] ss:$16 sps:$4 sm:$0xff]  }
  0x71   :  { %2365 = vmatprep.subr.bf16.mxu0 %v3529_v55  ;;  %2406 = vmatprep.subr.bf16.mxu1 %v3532_v56  ;;  %v3597_v54 = vld [vmem:[#allocation2 + $0x6e0] ss:$16 sps:$4 sm:$0xff]   ;;  %v3602_v55 = vld [vmem:[#allocation2 + $0x4c4] ss:$16 sps:$4 sm:$0xff]  }
  0x72   :  { %v3605_v56 = vld [vmem:[#allocation2 + $0x6c4] ss:$16 sps:$4 sm:$0xff]  }
  0x74   :  { %2366 = vmatpush1.bf16.msra.mxu0 %v3527_v57  ;;  %2407 = vmatpush1.bf16.msra.mxu1 %v3530_v58  ;;  %v3600_v57 = vld [vmem:[#allocation2 + $0x4c0] ss:$16 sps:$4 sm:$0xff]  }
  0x75   :  { %2367 = vmatprep.subr.bf16.mxu0 %v3535_v59  ;;  %2408 = vmatprep.subr.bf16.mxu1 %v3538_v60  ;;  %v3603_v58 = vld [vmem:[#allocation2 + $0x6c0] ss:$16 sps:$4 sm:$0xff]   ;;  %v3608_v59 = vld [vmem:[#allocation2 + $0x4a4] ss:$16 sps:$4 sm:$0xff]  }
  0x76   :  { %v3611_v60 = vld [vmem:[#allocation2 + $0x6a4] ss:$16 sps:$4 sm:$0xff]  }
  0x78   :  { %2368 = vmatpush1.bf16.msra.mxu0 %v3533_v0  ;;  %2409 = vmatpush1.bf16.msra.mxu1 %v3536_v1  ;;  %v3617_v0 = vld [vmem:[#allocation2 + $0x684] ss:$16 sps:$4 sm:$0xff]   ;;  %v3612_v1 = vld [vmem:[#allocation2 + $0x480] ss:$16 sps:$4 sm:$0xff]  }
  0x79   :  { %2369 = vmatprep.subr.bf16.mxu0 %v3541_v2  ;;  %2410 = vmatprep.subr.bf16.mxu1 %v3544_v3  ;;  %v92_v2 = vld [vmem:[%s4282_s0 + $0x8] sm:$0xff]  ;;  %v3615_v3 = vld [vmem:[#allocation2 + $0x680] ss:$16 sps:$4 sm:$0xff]  }
  0x7c   :  { %2370 = vmatpush1.bf16.msra.mxu0 %v3539_v6  ;;  %2411 = vmatpush1.bf16.msra.mxu1 %v3542_v7  ;;  %v4192_v6 = vrot.slane %v92_v2, %v4157_v10  ;;  %v114_v7 = vcombine.high %v92_v2, %v92_v2  ;;  %v3696_v2 = vld [vmem:[#allocation2 + $0xec] ss:$16 sps:$4 sm:$0xff]  }
  0x7d   :  { %2371 = vmatprep.subr.bf16.mxu0 %v3547_v8  ;;  %2412 = vmatprep.subr.bf16.mxu1 %v3550_v9  ;;  %v3623_v8 = vld [vmem:[#allocation2 + $0x664] ss:$16 sps:$4 sm:$0xff]  }
  0x7e   :  { %v129_v9 = vcombine.high %v4192_v6, %v4192_v6 }
  0x80   :  { %2372 = vmatpush2.bf16.msra.mxu0 %v3545_v11  ;;  %2413 = vmatpush2.bf16.msra.mxu1 %v3548_v12  ;;  %v4197_v11 = vrot.slane %v114_v7, %v4157_v10  ;;  %v3618_v12 = vld [vmem:[#allocation2 + $0x460] ss:$16 sps:$4 sm:$0xff]  }
  0x81   :  { %2373 = vmatprep.subr.bf16.mxu0 %v3553_v14  ;;  %2414 = vmatprep.subr.bf16.mxu1 %v3556_v15  ;;  %v3626_v14 = vld [vmem:[#allocation2 + $0x444] ss:$16 sps:$4 sm:$0xff]   ;;  %v4199_v15 = vpack.c.bf16 %v129_v9, %v129_v9  ;;  %v3627_v10 = vld [vmem:[#allocation2 + $0x640] ss:$16 sps:$4 sm:$0xff]   ;;  %v3694_v9 = vld [vmem:[#allocation2 + $0xe8] ss:$16 sps:$4 sm:$0xff]  }
  0x82   :  { %v130_v16 = vcombine.high %v4197_v11, %v4197_v11  ;;  %v4220_v7 = vpack.c.bf16 %v4197_v11, %v4197_v11  ;;  %v3705_v11 = vld [vmem:[#allocation2 + $0x8a4] ss:$16 sps:$4 sm:$0xff]  }
  0x84   :  { %2374 = vmatpush2.bf16.msra.mxu0 %v3551_v20  ;;  %2415 = vmatpush2.bf16.msra.mxu1 %v3554_v21  ;;  %v4204_v18 = vpack.c.bf16 %v130_v16, %v130_v16  ;;  %v3632_v20 = vld [vmem:[#allocation2 + $0x424] ss:$16 sps:$4 sm:$0xff]   ;;  %v3700_v16 = vld [vmem:[#allocation2 + $0xc8] ss:$16 sps:$4 sm:$0xff]  }
  0x85   :  { %2375 = vmatprep.subr.bf16.mxu0 %v3559_v22  ;;  %2416 = vmatprep.subr.bf16.mxu1 %v3562_v23  ;;  %v3635_v21 = vld [vmem:[#allocation2 + $0x624] ss:$16 sps:$4 sm:$0xff]   ;;  %v3630_v22 = vld [vmem:[#allocation2 + $0x420] ss:$16 sps:$4 sm:$0xff]  }
  0x86   :  { %v3633_v23 = vld [vmem:[#allocation2 + $0x620] ss:$16 sps:$4 sm:$0xff]  }
  0x88   :  { %2376 = vmatpush2.bf16.msra.mxu0 %v3557_v27  ;;  %2417 = vmatpush2.bf16.msra.mxu1 %v3560_v28  ;;  %v3641_v27 = vld [vmem:[#allocation2 + $0x604] ss:$16 sps:$4 sm:$0xff]   ;;  %v3636_v28 = vld [vmem:[#allocation2 + $0x400] ss:$16 sps:$4 sm:$0xff]  }
  0x89   :  { %2377 = vmatprep.subr.bf16.mxu0 %v3565_v29  ;;  %2418 = vmatprep.subr.bf16.mxu1 %v3568_v30  ;;  %v3639_v29 = vld [vmem:[#allocation2 + $0x600] ss:$16 sps:$4 sm:$0xff]   ;;  %v3644_v30 = vld [vmem:[#allocation2 + $0x5e4] ss:$16 sps:$4 sm:$0xff]  }
  0x8c   :  { %2378 = vmatpush2.bf16.msra.mxu0 %v3563_v31  ;;  %2419 = vmatpush2.bf16.msra.mxu1 %v3566_v32  ;;  %v3647_v31 = vld [vmem:[#allocation2 + $0x7e4] ss:$16 sps:$4 sm:$0xff]   ;;  %v3642_v32 = vld [vmem:[#allocation2 + $0x5e0] ss:$16 sps:$4 sm:$0xff]  }
  0x8d   :  { %2379 = vmatprep.subr.bf16.mxu0 %v3571_v33  ;;  %2420 = vmatprep.subr.bf16.mxu1 %v3574_v34  ;;  %v3645_v33 = vld [vmem:[#allocation2 + $0x7e0] ss:$16 sps:$4 sm:$0xff]   ;;  %v3650_v34 = vld [vmem:[#allocation2 + $0x5c4] ss:$16 sps:$4 sm:$0xff]  }
  0x90   :  { %2380 = vmatpush2.bf16.msra.mxu0 %v3569_v35  ;;  %2421 = vmatpush2.bf16.msra.mxu1 %v3572_v36  ;;  %v3653_v35 = vld [vmem:[#allocation2 + $0x7c4] ss:$16 sps:$4 sm:$0xff]   ;;  %v3648_v36 = vld [vmem:[#allocation2 + $0x5c0] ss:$16 sps:$4 sm:$0xff]  }
  0x91   :  { %2381 = vmatprep.subr.bf16.mxu0 %v3577_v37  ;;  %2422 = vmatprep.subr.bf16.mxu1 %v3580_v38  ;;  %v3651_v37 = vld [vmem:[#allocation2 + $0x7c0] ss:$16 sps:$4 sm:$0xff]   ;;  %v3656_v38 = vld [vmem:[#allocation2 + $0x5a4] ss:$16 sps:$4 sm:$0xff]  }
  0x94   :  { %2382 = vmatpush2.bf16.msra.mxu0 %v3575_v39  ;;  %2423 = vmatpush2.bf16.msra.mxu1 %v3578_v40  ;;  %v3659_v39 = vld [vmem:[#allocation2 + $0x7a4] ss:$16 sps:$4 sm:$0xff]   ;;  %v3654_v40 = vld [vmem:[#allocation2 + $0x5a0] ss:$16 sps:$4 sm:$0xff]  }
  0x95   :  { %2383 = vmatprep.subr.bf16.mxu0 %v3583_v41  ;;  %2424 = vmatprep.subr.bf16.mxu1 %v3586_v42  ;;  %v3657_v41 = vld [vmem:[#allocation2 + $0x7a0] ss:$16 sps:$4 sm:$0xff]   ;;  %v3662_v42 = vld [vmem:[#allocation2 + $0x584] ss:$16 sps:$4 sm:$0xff]  }
  0x98   :  { %2384 = vmatpush2.bf16.msra.mxu0 %v3581_v43  ;;  %2425 = vmatpush2.bf16.msra.mxu1 %v3584_v44  ;;  %v3665_v43 = vld [vmem:[#allocation2 + $0x784] ss:$16 sps:$4 sm:$0xff]   ;;  %v3660_v44 = vld [vmem:[#allocation2 + $0x580] ss:$16 sps:$4 sm:$0xff]  }
  0x99   :  { %2385 = vmatprep.subr.bf16.mxu0 %v3589_v45  ;;  %2426 = vmatprep.subr.bf16.mxu1 %v3592_v46  ;;  %v3663_v45 = vld [vmem:[#allocation2 + $0x780] ss:$16 sps:$4 sm:$0xff]   ;;  %v3668_v46 = vld [vmem:[#allocation2 + $0x564] ss:$16 sps:$4 sm:$0xff]  }
  0x9c   :  { %2386 = vmatpush2.bf16.msra.mxu0 %v3587_v47  ;;  %2427 = vmatpush2.bf16.msra.mxu1 %v3590_v48  ;;  %v3671_v47 = vld [vmem:[#allocation2 + $0x764] ss:$16 sps:$4 sm:$0xff]   ;;  %v3666_v48 = vld [vmem:[#allocation2 + $0x560] ss:$16 sps:$4 sm:$0xff]  }
  0x9d   :  { %2437 = vmatprep.subr.bf16.mxu0 %v3596_v49  ;;  %2478 = vmatprep.subr.bf16.mxu1 %v3599_v50  ;;  %v3669_v49 = vld [vmem:[#allocation2 + $0x760] ss:$16 sps:$4 sm:$0xff]   ;;  %v3674_v50 = vld [vmem:[#allocation2 + $0x544] ss:$16 sps:$4 sm:$0xff]  }
  0x9f   :  { %2388 = vmatmul.mubr.bf16.vlgmr.msra.gmra.mxu0 %v4180_v51  ;;  %2429 = vmatmul.mubr.bf16.vlgmr.msra.gmra.mxu1 %v4184_v52 }
  0xa0   :  { %2438 = vmatpush1.bf16.msra.mxu0 %v3594_v53  ;;  %2479 = vmatpush1.bf16.msra.mxu1 %v3597_v54  ;;  %v3677_v53 = vld [vmem:[#allocation2 + $0x744] ss:$16 sps:$4 sm:$0xff]   ;;  %v3672_v54 = vld [vmem:[#allocation2 + $0x540] ss:$16 sps:$4 sm:$0xff]  }
  0xa1   :  { %2439 = vmatprep.subr.bf16.mxu0 %v3602_v55  ;;  %2480 = vmatprep.subr.bf16.mxu1 %v3605_v56  ;;  %v3675_v55 = vld [vmem:[#allocation2 + $0x740] ss:$16 sps:$4 sm:$0xff]   ;;  %v3680_v56 = vld [vmem:[#allocation2 + $0x524] ss:$16 sps:$4 sm:$0xff]  }
  0xa2   :  { %2469 = vmatprep.mubr.bf16.mxu0 %v4199_v15  ;;  %2510 = vmatprep.mubr.bf16.mxu1 %v4204_v18 }
  0xa4   :  { %2440 = vmatpush1.bf16.msra.mxu0 %v3600_v57  ;;  %2481 = vmatpush1.bf16.msra.mxu1 %v3603_v58  ;;  %v3683_v57 = vld [vmem:[#allocation2 + $0x724] ss:$16 sps:$4 sm:$0xff]   ;;  %v3678_v58 = vld [vmem:[#allocation2 + $0x520] ss:$16 sps:$4 sm:$0xff]  }
  0xa5   :  { %2441 = vmatprep.subr.bf16.mxu0 %v3608_v59  ;;  %2482 = vmatprep.subr.bf16.mxu1 %v3611_v60  ;;  %v3681_v59 = vld [vmem:[#allocation2 + $0x720] ss:$16 sps:$4 sm:$0xff]   ;;  %v3686_v60 = vld [vmem:[#allocation2 + $0x504] ss:$16 sps:$4 sm:$0xff]  }
  0xa8   :  { %2442 = vmatpush1.bf16.msra.mxu0 %v3606_v61  ;;  %2483 = vmatpush1.bf16.msra.mxu1 %v3609_v62  ;;  %v3689_v61 = vld [vmem:[#allocation2 + $0x704] ss:$16 sps:$4 sm:$0xff]   ;;  %v3684_v62 = vld [vmem:[#allocation2 + $0x500] ss:$16 sps:$4 sm:$0xff]  }
  0xa9   :  { %2443 = vmatprep.subr.bf16.mxu0 %v3614_v63  ;;  %2484 = vmatprep.subr.bf16.mxu1 %v3617_v0  ;;  %v4210_v63 = vld.sshfl [vmem:[%s4282_s0 + $0x10] sm:$0x33 pattern:$0x76325410] }
  0xaa   :  { %v3687_v0 = vld [vmem:[#allocation2 + $0x700] ss:$16 sps:$4 sm:$0xff]  }
  0xac   :  { %2444 = vmatpush1.bf16.msra.mxu0 %v3612_v1  ;;  %2485 = vmatpush1.bf16.msra.mxu1 %v3615_v3  ;;  %v3693_v1 = vld [vmem:[#allocation2 + $0x8e4] ss:$16 sps:$4 sm:$0xff]   ;;  %v138_v3 = vcombine.high %v4210_v63, %v4210_v63 }
  0xad   :  { %2445 = vmatprep.subr.bf16.mxu0 %v3620_v4  ;;  %2486 = vmatprep.subr.bf16.mxu1 %v3623_v8  ;;  %v4216_v4 = vpack.c.bf16 %v4192_v6, %v4192_v6  ;;  %v3691_v8 = vld [vmem:[#allocation2 + $0x8e0] ss:$16 sps:$4 sm:$0xff]  }
  0xae   :  { %v3697_v6 = vld [vmem:[#allocation2 + $0x8c0] ss:$16 sps:$4 sm:$0xff]  }
  0xb0   :  { %2446 = vmatpush1.bf16.msra.mxu0 %v3618_v12  ;;  %2487 = vmatpush1.bf16.msra.mxu1 %v3621_v13  ;;  %v3699_v12 = vld [vmem:[#allocation2 + $0x8c4] ss:$16 sps:$4 sm:$0xff]   ;;  %v3702_v13 = vld [vmem:[#allocation2 + $0xcc] ss:$16 sps:$4 sm:$0xff]  }
  0xb1   :  { %2447 = vmatprep.subr.bf16.mxu0 %v3626_v14  ;;  %2488 = vmatprep.subr.bf16.mxu1 %v3629_v17  ;;  %v4222_v14 = vpack.c.bf16 %v138_v3, %v138_v3  ;;  %v3708_v17 = vld [vmem:[#allocation2 + $0xac] ss:$16 sps:$4 sm:$0xff]   ;;  %v3772_v3 = vld [vmem:[#allocation2 + $0x148] ss:$16 sps:$4 sm:$0xff]  }
  0xb4   :  { %2448 = vmatpush1.bf16.msra.mxu0 %v3624_v19  ;;  %2489 = vmatpush1.bf16.msra.mxu1 %v3627_v10  ;;  %v3703_v19 = vld [vmem:[#allocation2 + $0x8a0] ss:$16 sps:$4 sm:$0xff]   ;;  %v3706_v10 = vld [vmem:[#allocation2 + $0xa8] ss:$16 sps:$4 sm:$0xff]  }
  0xb5   :  { %2449 = vmatprep.subr.bf16.mxu0 %v3632_v20  ;;  %2490 = vmatprep.subr.bf16.mxu1 %v3635_v21  ;;  %v3711_v20 = vld [vmem:[#allocation2 + $0x884] ss:$16 sps:$4 sm:$0xff]   ;;  %v3714_v21 = vld [vmem:[#allocation2 + $0x8c] ss:$16 sps:$4 sm:$0xff]  }
  0xb8   :  { %2450 = vmatpush1.bf16.msra.mxu0 %v3630_v22  ;;  %2491 = vmatpush1.bf16.msra.mxu1 %v3633_v23  ;;  %v3709_v22 = vld [vmem:[#allocation2 + $0x880] ss:$16 sps:$4 sm:$0xff]   ;;  %v3712_v23 = vld [vmem:[#allocation2 + $0x88] ss:$16 sps:$4 sm:$0xff]  }
  0xb9   :  { %2451 = vmatprep.subr.bf16.mxu0 %v3638_v25  ;;  %2492 = vmatprep.subr.bf16.mxu1 %v3641_v27  ;;  %v3717_v25 = vld [vmem:[#allocation2 + $0x864] ss:$16 sps:$4 sm:$0xff]   ;;  %v3720_v27 = vld [vmem:[#allocation2 + $0x6c] ss:$16 sps:$4 sm:$0xff]  }
  0xbc   :  { %2452 = vmatpush1.bf16.msra.mxu0 %v3636_v28  ;;  %2493 = vmatpush1.bf16.msra.mxu1 %v3639_v29  ;;  %v3715_v28 = vld [vmem:[#allocation2 + $0x860] ss:$16 sps:$4 sm:$0xff]   ;;  %v3723_v29 = vld [vmem:[#allocation2 + $0x844] ss:$16 sps:$4 sm:$0xff]  }
  0xbd   :  { %2453 = vmatprep.subr.bf16.mxu0 %v3644_v30  ;;  %2494 = vmatprep.subr.bf16.mxu1 %v3647_v31  ;;  %v3726_v30 = vld [vmem:[#allocation2 + $0x4c] ss:$16 sps:$4 sm:$0xff]   ;;  %v3721_v31 = vld [vmem:[#allocation2 + $0x840] ss:$16 sps:$4 sm:$0xff]  }
  0xc0   :  { %2454 = vmatpush2.bf16.msra.mxu0 %v3642_v32  ;;  %2495 = vmatpush2.bf16.msra.mxu1 %v3645_v33  ;;  %v3724_v32 = vld [vmem:[#allocation2 + $0x48] ss:$16 sps:$4 sm:$0xff]   ;;  %v3729_v33 = vld [vmem:[#allocation2 + $0x824] ss:$16 sps:$4 sm:$0xff]  }
  0xc1   :  { %2455 = vmatprep.subr.bf16.mxu0 %v3650_v34  ;;  %2496 = vmatprep.subr.bf16.mxu1 %v3653_v35  ;;  %v3732_v34 = vld [vmem:[#allocation2 + $0x2c] ss:$16 sps:$4 sm:$0xff]   ;;  %v3727_v35 = vld [vmem:[#allocation2 + $0x820] ss:$16 sps:$4 sm:$0xff]  }
  0xc4   :  { %2456 = vmatpush2.bf16.msra.mxu0 %v3648_v36  ;;  %2497 = vmatpush2.bf16.msra.mxu1 %v3651_v37  ;;  %v3730_v36 = vld [vmem:[#allocation2 + $0x28] ss:$16 sps:$4 sm:$0xff]   ;;  %v3735_v37 = vld [vmem:[#allocation2 + $0x804] ss:$16 sps:$4 sm:$0xff]  }
  0xc5   :  { %2457 = vmatprep.subr.bf16.mxu0 %v3656_v38  ;;  %2498 = vmatprep.subr.bf16.mxu1 %v3659_v39  ;;  %v3738_v38 = vld [vmem:[#allocation2 + $0xc] ss:$16 sps:$4 sm:$0xff]   ;;  %v3733_v39 = vld [vmem:[#allocation2 + $0x800] ss:$16 sps:$4 sm:$0xff]  }
  0xc8   :  { %2458 = vmatpush2.bf16.msra.mxu0 %v3654_v40  ;;  %2499 = vmatpush2.bf16.msra.mxu1 %v3657_v41  ;;  %v3736_v40 = vld [vmem:[#allocation2 + $0x8] ss:$16 sps:$4 sm:$0xff]   ;;  %v3741_v41 = vld [vmem:[#allocation2 + $0x9e4] ss:$16 sps:$4 sm:$0xff]  }
  0xc9   :  { %2459 = vmatprep.subr.bf16.mxu0 %v3662_v42  ;;  %2500 = vmatprep.subr.bf16.mxu1 %v3665_v43  ;;  %v3744_v42 = vld [vmem:[#allocation2 + $0x1ec] ss:$16 sps:$4 sm:$0xff]   ;;  %v3739_v43 = vld [vmem:[#allocation2 + $0x9e0] ss:$16 sps:$4 sm:$0xff]  }
  0xcc   :  { %2460 = vmatpush2.bf16.msra.mxu0 %v3660_v44  ;;  %2501 = vmatpush2.bf16.msra.mxu1 %v3663_v45  ;;  %v3742_v44 = vld [vmem:[#allocation2 + $0x1e8] ss:$16 sps:$4 sm:$0xff]   ;;  %v3747_v45 = vld [vmem:[#allocation2 + $0x9c4] ss:$16 sps:$4 sm:$0xff]  }
  0xcd   :  { %2461 = vmatprep.subr.bf16.mxu0 %v3668_v46  ;;  %2502 = vmatprep.subr.bf16.mxu1 %v3671_v47  ;;  %v3750_v46 = vld [vmem:[#allocation2 + $0x1cc] ss:$16 sps:$4 sm:$0xff]   ;;  %v3745_v47 = vld [vmem:[#allocation2 + $0x9c0] ss:$16 sps:$4 sm:$0xff]  }
  0xd0   :  { %2462 = vmatpush2.bf16.msra.mxu0 %v3666_v48  ;;  %2503 = vmatpush2.bf16.msra.mxu1 %v3669_v49  ;;  %v3748_v48 = vld [vmem:[#allocation2 + $0x1c8] ss:$16 sps:$4 sm:$0xff]   ;;  %v3753_v49 = vld [vmem:[#allocation2 + $0x9a4] ss:$16 sps:$4 sm:$0xff]  }
  0xd1   :  { %2463 = vmatprep.subr.bf16.mxu0 %v3674_v50  ;;  %2504 = vmatprep.subr.bf16.mxu1 %v3677_v53  ;;  %v3756_v50 = vld [vmem:[#allocation2 + $0x1ac] ss:$16 sps:$4 sm:$0xff]   ;;  %v3751_v53 = vld [vmem:[#allocation2 + $0x9a0] ss:$16 sps:$4 sm:$0xff]  }
  0xd4   :  { %2464 = vmatpush2.bf16.msra.mxu0 %v3672_v54  ;;  %2505 = vmatpush2.bf16.msra.mxu1 %v3675_v55  ;;  %v3754_v54 = vld [vmem:[#allocation2 + $0x1a8] ss:$16 sps:$4 sm:$0xff]   ;;  %v3759_v55 = vld [vmem:[#allocation2 + $0x984] ss:$16 sps:$4 sm:$0xff]  }
  0xd5   :  { %2465 = vmatprep.subr.bf16.mxu0 %v3680_v56  ;;  %2506 = vmatprep.subr.bf16.mxu1 %v3683_v57  ;;  %v3762_v56 = vld [vmem:[#allocation2 + $0x18c] ss:$16 sps:$4 sm:$0xff]   ;;  %v3757_v57 = vld [vmem:[#allocation2 + $0x980] ss:$16 sps:$4 sm:$0xff]  }
  0xd8   :  { %2466 = vmatpush2.bf16.msra.mxu0 %v3678_v58  ;;  %2507 = vmatpush2.bf16.msra.mxu1 %v3681_v59  ;;  %v3760_v58 = vld [vmem:[#allocation2 + $0x188] ss:$16 sps:$4 sm:$0xff]   ;;  %v3765_v59 = vld [vmem:[#allocation2 + $0x964] ss:$16 sps:$4 sm:$0xff]  }
  0xd9   :  { %2467 = vmatprep.subr.bf16.mxu0 %v3686_v60  ;;  %2508 = vmatprep.subr.bf16.mxu1 %v3689_v61  ;;  %v3768_v60 = vld [vmem:[#allocation2 + $0x16c] ss:$16 sps:$4 sm:$0xff]   ;;  %v3763_v61 = vld [vmem:[#allocation2 + $0x960] ss:$16 sps:$4 sm:$0xff]  }
  0xdc   :  { %2468 = vmatpush2.bf16.msra.mxu0 %v3684_v62  ;;  %2509 = vmatpush2.bf16.msra.mxu1 %v3687_v0  ;;  %v3766_v62 = vld [vmem:[#allocation2 + $0x168] ss:$16 sps:$4 sm:$0xff]   ;;  %v3771_v0 = vld [vmem:[#allocation2 + $0x944] ss:$16 sps:$4 sm:$0xff]  }
  0xdd   :  { %2519 = vmatprep.subr.bf16.mxu0 %v3693_v1  ;;  %2560 = vmatprep.subr.bf16.mxu1 %v3696_v2  ;;  %v3774_v1 = vld [vmem:[#allocation2 + $0x14c] ss:$16 sps:$4 sm:$0xff]   ;;  %v3769_v2 = vld [vmem:[#allocation2 + $0x940] ss:$16 sps:$4 sm:$0xff]  }
  0xdf   :  { %2470 = vmatmul.mubr.bf16.vlgmr.msra.gmra.mxu0 %v4216_v4  ;;  %2511 = vmatmul.mubr.bf16.vlgmr.msra.gmra.mxu1 %v4220_v7 }
  0xe0   :  { %2520 = vmatpush1.bf16.msra.mxu0 %v3691_v8  ;;  %2561 = vmatpush1.bf16.msra.mxu1 %v3694_v9  ;;  %v3777_v8 = vld [vmem:[#allocation2 + $0x924] ss:$16 sps:$4 sm:$0xff]   ;;  %v3780_v9 = vld [vmem:[#allocation2 + $0x12c] ss:$16 sps:$4 sm:$0xff]  }
  0xe1   :  { %2521 = vmatprep.subr.bf16.mxu0 %v3699_v12  ;;  %2562 = vmatprep.subr.bf16.mxu1 %v3702_v13  ;;  %v3775_v12 = vld [vmem:[#allocation2 + $0x920] ss:$16 sps:$4 sm:$0xff]   ;;  %v3778_v13 = vld [vmem:[#allocation2 + $0x128] ss:$16 sps:$4 sm:$0xff]  }
  0xe2   :  { %2551 = vmatprep.mubr.bf16.mxu0 %v4222_v14  ;;  %2592 = vmatprep.mubr.bf16.mxu1 %v4170_v24  ;;  %v3718_v24 = vld [vmem:[#allocation2 + $0x68] ss:$16 sps:$4 sm:$0xff]  }
  0xe4   :  { %2522 = vmatpush1.bf16.msra.mxu0 %v3697_v6  ;;  %2563 = vmatpush1.bf16.msra.mxu1 %v3700_v16  ;;  %v3783_v6 = vld [vmem:[#allocation2 + $0x904] ss:$16 sps:$4 sm:$0xff]   ;;  %v3786_v16 = vld [vmem:[#allocation2 + $0x10c] ss:$16 sps:$4 sm:$0xff]  }
  0xe5   :  { %2523 = vmatprep.subr.bf16.mxu0 %v3705_v11  ;;  %2564 = vmatprep.subr.bf16.mxu1 %v3708_v17  ;;  %v3781_v11 = vld [vmem:[#allocation2 + $0x900] ss:$16 sps:$4 sm:$0xff]   ;;  %v3784_v17 = vld [vmem:[#allocation2 + $0x108] ss:$16 sps:$4 sm:$0xff]  }
  0xe8   :  { %2524 = vmatpush1.bf16.msra.mxu0 %v3703_v19  ;;  %2565 = vmatpush1.bf16.msra.mxu1 %v3706_v10  ;;  %v3789_v19 = vld [vmem:[#allocation2 + $0x2ec] ss:$16 sps:$4 sm:$0xff]  }
  0xe9   :  { %2525 = vmatprep.subr.bf16.mxu0 %v3711_v20  ;;  %2566 = vmatprep.subr.bf16.mxu1 %v3714_v21  ;;  %v3792_v10 = vld [vmem:[#allocation2 + $0x4ec] ss:$16 sps:$4 sm:$0xff]   ;;  %v4230_v20 = vpack.c.bf16 %v4210_v63, %v4210_v63  ;;  %v3787_v21 = vld [vmem:[#allocation2 + $0x2e8] ss:$16 sps:$4 sm:$0xff]  }
  0xea   :  { %v3796_v63 = vld [vmem:[#allocation2 + $0x4c8] ss:$16 sps:$4 sm:$0xff]  }
  0xec   :  { %2526 = vmatpush1.bf16.msra.mxu0 %v3709_v22  ;;  %2567 = vmatpush1.bf16.msra.mxu1 %v3712_v23  ;;  %v3790_v22 = vld [vmem:[#allocation2 + $0x4e8] ss:$16 sps:$4 sm:$0xff]   ;;  %v3795_v23 = vld [vmem:[#allocation2 + $0x2cc] ss:$16 sps:$4 sm:$0xff]  }
  0xed   :  { %2527 = vmatprep.subr.bf16.mxu0 %v3717_v25  ;;  %2568 = vmatprep.subr.bf16.mxu1 %v3720_v27  ;;  %v3798_v25 = vld [vmem:[#allocation2 + $0x4cc] ss:$16 sps:$4 sm:$0xff]  }
  0xf0   :  { %2528 = vmatpush1.bf16.msra.mxu0 %v3715_v28  ;;  %2569 = vmatpush1.bf16.msra.mxu1 %v3718_v24  ;;  %v3793_v24 = vld [vmem:[#allocation2 + $0x2c8] ss:$16 sps:$4 sm:$0xff]  }
  0xf1   :  { %2529 = vmatprep.subr.bf16.mxu0 %v3723_v29  ;;  %2570 = vmatprep.subr.bf16.mxu1 %v3726_v30 }
  0xf4   :  { %2530 = vmatpush1.bf16.msra.mxu0 %v3721_v31  ;;  %2571 = vmatpush1.bf16.msra.mxu1 %v3724_v32  ;;  %v3801_v31 = vld [vmem:[#allocation2 + $0x2ac] ss:$16 sps:$4 sm:$0xff]  }
  0xf5   :  { %2531 = vmatprep.subr.bf16.mxu0 %v3729_v33  ;;  %2572 = vmatprep.subr.bf16.mxu1 %v3732_v34  ;;  %v3804_v32 = vld [vmem:[#allocation2 + $0x4ac] ss:$16 sps:$4 sm:$0xff]  }
  0xf8   :  { %2532 = vmatpush1.bf16.msra.mxu0 %v3727_v35  ;;  %2573 = vmatpush1.bf16.msra.mxu1 %v3730_v36  ;;  %v3799_v35 = vld [vmem:[#allocation2 + $0x2a8] ss:$16 sps:$4 sm:$0xff]  }
  0xf9   :  { %2533 = vmatprep.subr.bf16.mxu0 %v3735_v37  ;;  %2574 = vmatprep.subr.bf16.mxu1 %v3738_v38  ;;  %v3807_v38 = vld [vmem:[#allocation2 + $0x28c] ss:$16 sps:$4 sm:$0xff]  }
  0xfc   :  { %2534 = vmatpush1.bf16.msra.mxu0 %v3733_v39  ;;  %2575 = vmatpush1.bf16.msra.mxu1 %v3736_v40  ;;  %v3810_v39 = vld [vmem:[#allocation2 + $0x48c] ss:$16 sps:$4 sm:$0xff]   ;;  %v3805_v40 = vld [vmem:[#allocation2 + $0x288] ss:$16 sps:$4 sm:$0xff]  }
  0xfd   :  { %2535 = vmatprep.subr.bf16.mxu0 %v3741_v41  ;;  %2576 = vmatprep.subr.bf16.mxu1 %v3744_v42  ;;  %v3808_v41 = vld [vmem:[#allocation2 + $0x488] ss:$16 sps:$4 sm:$0xff]  }
  0xfe   :  { %v3811_v42 = vld [vmem:[#allocation2 + $0x268] ss:$16 sps:$4 sm:$0xff]  }
 0x100   :  { %2536 = vmatpush2.bf16.msra.mxu0 %v3739_v43  ;;  %2577 = vmatpush2.bf16.msra.mxu1 %v3742_v44  ;;  %v3814_v43 = vld [vmem:[#allocation2 + $0x468] ss:$16 sps:$4 sm:$0xff]   ;;  %v3819_v44 = vld [vmem:[#allocation2 + $0x24c] ss:$16 sps:$4 sm:$0xff]  }
 0x101   :  { %2537 = vmatprep.subr.bf16.mxu0 %v3747_v45  ;;  %2578 = vmatprep.subr.bf16.mxu1 %v3750_v46  ;;  %v3822_v45 = vld [vmem:[#allocation2 + $0x44c] ss:$16 sps:$4 sm:$0xff]   ;;  %v3817_v46 = vld [vmem:[#allocation2 + $0x248] ss:$16 sps:$4 sm:$0xff]  }
 0x104   :  { %2538 = vmatpush2.bf16.msra.mxu0 %v3745_v47  ;;  %2579 = vmatpush2.bf16.msra.mxu1 %v3748_v48  ;;  %v3820_v47 = vld [vmem:[#allocation2 + $0x448] ss:$16 sps:$4 sm:$0xff]   ;;  %v3825_v48 = vld [vmem:[#allocation2 + $0x22c] ss:$16 sps:$4 sm:$0xff]  }
 0x105   :  { %2539 = vmatprep.subr.bf16.mxu0 %v3753_v49  ;;  %2580 = vmatprep.subr.bf16.mxu1 %v3756_v50  ;;  %v3828_v49 = vld [vmem:[#allocation2 + $0x42c] ss:$16 sps:$4 sm:$0xff]   ;;  %v3823_v50 = vld [vmem:[#allocation2 + $0x228] ss:$16 sps:$4 sm:$0xff]  }
 0x108   :  { %2540 = vmatpush2.bf16.msra.mxu0 %v3751_v53  ;;  %2581 = vmatpush2.bf16.msra.mxu1 %v3754_v54  ;;  %v3826_v53 = vld [vmem:[#allocation2 + $0x428] ss:$16 sps:$4 sm:$0xff]   ;;  %v3831_v54 = vld [vmem:[#allocation2 + $0x20c] ss:$16 sps:$4 sm:$0xff]  }
 0x109   :  { %2541 = vmatprep.subr.bf16.mxu0 %v3759_v55  ;;  %2582 = vmatprep.subr.bf16.mxu1 %v3762_v56  ;;  %v3834_v55 = vld [vmem:[#allocation2 + $0x40c] ss:$16 sps:$4 sm:$0xff]   ;;  %v3829_v56 = vld [vmem:[#allocation2 + $0x208] ss:$16 sps:$4 sm:$0xff]  }
 0x10c   :  { %2542 = vmatpush2.bf16.msra.mxu0 %v3757_v57  ;;  %2583 = vmatpush2.bf16.msra.mxu1 %v3760_v58  ;;  %v3832_v57 = vld [vmem:[#allocation2 + $0x408] ss:$16 sps:$4 sm:$0xff]   ;;  %v3837_v58 = vld [vmem:[#allocation2 + $0x3ec] ss:$16 sps:$4 sm:$0xff]  }
 0x10d   :  { %2543 = vmatprep.subr.bf16.mxu0 %v3765_v59  ;;  %2584 = vmatprep.subr.bf16.mxu1 %v3768_v60  ;;  %v3840_v59 = vld [vmem:[#allocation2 + $0x5ec] ss:$16 sps:$4 sm:$0xff]   ;;  %v3835_v60 = vld [vmem:[#allocation2 + $0x3e8] ss:$16 sps:$4 sm:$0xff]  }
 0x110   :  { %2544 = vmatpush2.bf16.msra.mxu0 %v3763_v61  ;;  %2585 = vmatpush2.bf16.msra.mxu1 %v3766_v62  ;;  %v3838_v61 = vld [vmem:[#allocation2 + $0x5e8] ss:$16 sps:$4 sm:$0xff]   ;;  %v3843_v62 = vld [vmem:[#allocation2 + $0x3cc] ss:$16 sps:$4 sm:$0xff]  }
 0x111   :  { %2545 = vmatprep.subr.bf16.mxu0 %v3771_v0  ;;  %2586 = vmatprep.subr.bf16.mxu1 %v3774_v1  ;;  %v3846_v0 = vld [vmem:[#allocation2 + $0x5cc] ss:$16 sps:$4 sm:$0xff]   ;;  %v3841_v1 = vld [vmem:[#allocation2 + $0x3c8] ss:$16 sps:$4 sm:$0xff]  }
 0x114   :  { %2546 = vmatpush2.bf16.msra.mxu0 %v3769_v2  ;;  %2587 = vmatpush2.bf16.msra.mxu1 %v3772_v3  ;;  %v3844_v2 = vld [vmem:[#allocation2 + $0x5c8] ss:$16 sps:$4 sm:$0xff]   ;;  %v3849_v3 = vld [vmem:[#allocation2 + $0x3ac] ss:$16 sps:$4 sm:$0xff]  }
 0x115   :  { %2547 = vmatprep.subr.bf16.mxu0 %v3777_v8  ;;  %2588 = vmatprep.subr.bf16.mxu1 %v3780_v9  ;;  %v3852_v8 = vld [vmem:[#allocation2 + $0x5ac] ss:$16 sps:$4 sm:$0xff]   ;;  %v3847_v9 = vld [vmem:[#allocation2 + $0x3a8] ss:$16 sps:$4 sm:$0xff]  }
 0x118   :  { %2548 = vmatpush2.bf16.msra.mxu0 %v3775_v12  ;;  %2589 = vmatpush2.bf16.msra.mxu1 %v3778_v13  ;;  %v3850_v12 = vld [vmem:[#allocation2 + $0x5a8] ss:$16 sps:$4 sm:$0xff]   ;;  %v3855_v13 = vld [vmem:[#allocation2 + $0x38c] ss:$16 sps:$4 sm:$0xff]  }
 0x119   :  { %2549 = vmatprep.subr.bf16.mxu0 %v3783_v6  ;;  %2590 = vmatprep.subr.bf16.mxu1 %v3786_v16  ;;  %v3858_v6 = vld [vmem:[#allocation2 + $0x58c] ss:$16 sps:$4 sm:$0xff]   ;;  %v3853_v16 = vld [vmem:[#allocation2 + $0x388] ss:$16 sps:$4 sm:$0xff]  }
 0x11c   :  { %2550 = vmatpush2.bf16.msra.mxu0 %v3781_v11  ;;  %2591 = vmatpush2.bf16.msra.mxu1 %v3784_v17  ;;  %v3856_v11 = vld [vmem:[#allocation2 + $0x588] ss:$16 sps:$4 sm:$0xff]   ;;  %v3861_v17 = vld [vmem:[#allocation2 + $0x36c] ss:$16 sps:$4 sm:$0xff]  }
 0x11d   :  { %2601 = vmatprep.subr.bf16.mxu0 %v3789_v19  ;;  %2642 = vmatprep.subr.bf16.mxu1 %v3792_v10  ;;  %v3864_v19 = vld [vmem:[#allocation2 + $0x56c] ss:$16 sps:$4 sm:$0xff]   ;;  %v3859_v10 = vld [vmem:[#allocation2 + $0x368] ss:$16 sps:$4 sm:$0xff]  }
 0x11f   :  { %v4232_v27 = vpop.f32.mrf.mxu0  ;;  %v4234_v28 = vpop.f32.mrf.mxu1  ;;  %2552 = vmatmul.mubr.bf16.vlgmr.msra.gmra.mxu0 %v4230_v20  ;;  %2593 = vmatmul.mubr.bf16.vlgmr.msra.gmra.mxu1 %v4180_v51  ;;  %v3802_v51 = vld [vmem:[#allocation2 + $0x4a8] ss:$16 sps:$4 sm:$0xff]  }
 0x120   :  { %2602 = vmatpush1.bf16.msra.mxu0 %v3787_v21  ;;  %2643 = vmatpush1.bf16.msra.mxu1 %v3790_v22  ;;  %v3862_v21 = vld [vmem:[#allocation2 + $0x568] ss:$16 sps:$4 sm:$0xff]   ;;  %v3867_v22 = vld [vmem:[#allocation2 + $0x34c] ss:$16 sps:$4 sm:$0xff]  }
 0x121   :  { %v4238_v29 = vpop.f32.mrf.mxu0  ;;  %v4240_v30 = vpop.f32.mrf.mxu1  ;;  %2603 = vmatprep.subr.bf16.mxu0 %v3795_v23  ;;  %2644 = vmatprep.subr.bf16.mxu1 %v3798_v25  ;;  %v3870_v23 = vld [vmem:[#allocation2 + $0x54c] ss:$16 sps:$4 sm:$0xff]   ;;  %v3865_v25 = vld [vmem:[#allocation2 + $0x348] ss:$16 sps:$4 sm:$0xff]  }
 0x122   :  { %2633 = vmatprep.mubr.bf16.mxu0 %v4175_v26  ;;  %2674 = vmatprep.mubr.bf16.mxu1 %v4199_v15  ;;  %v3813_v26 = vld [vmem:[#allocation2 + $0x26c] ss:$16 sps:$4 sm:$0xff]  }
 0x123   :  { %v711_v33 = vpop.f32.mrf.mxu0  ;;  %v752_v34 = vpop.f32.mrf.mxu1  ;;  %v3816_v15 = vld [vmem:[#allocation2 + $0x46c] ss:$16 sps:$4 sm:$0xff]  }
 0x124   :  { %2604 = vmatpush1.bf16.msra.mxu0 %v3793_v24  ;;  %2645 = vmatpush1.bf16.msra.mxu1 %v3796_v63  ;;  %v3868_v24 = vld [vmem:[#allocation2 + $0x548] ss:$16 sps:$4 sm:$0xff]   ;;  %v3873_v63 = vld [vmem:[#allocation2 + $0x32c] ss:$16 sps:$4 sm:$0xff]  }
 0x125   :  { %v712_v36 = vpop.f32.mrf.mxu0  ;;  %v753_v37 = vpop.f32.mrf.mxu1  ;;  %2605 = vmatprep.subr.bf16.mxu0 %v3801_v31  ;;  %2646 = vmatprep.subr.bf16.mxu1 %v3804_v32  ;;  %v3876_v31 = vld [vmem:[#allocation2 + $0x52c] ss:$16 sps:$4 sm:$0xff]   ;;  %v3871_v32 = vld [vmem:[#allocation2 + $0x328] ss:$16 sps:$4 sm:$0xff]  }
 0x126   :  { %v3874_v33 = vld [vmem:[#allocation2 + $0x528] ss:$16 sps:$4 sm:$0xff]   ;;  %v3879_v34 = vld [vmem:[#allocation2 + $0x30c] ss:$16 sps:$4 sm:$0xff]  }
 0x127   :  { %v3880_v36 = vld [vmem:[#allocation2 + $0x508] ss:$16 sps:$4 sm:$0xff]   ;;  %v3885_v37 = vld [vmem:[#allocation2 + $0x6ec] ss:$16 sps:$4 sm:$0xff]  }
 0x128   :  { %2606 = vmatpush1.bf16.msra.mxu0 %v3799_v35  ;;  %2647 = vmatpush1.bf16.msra.mxu1 %v3802_v51  ;;  %v3882_v35 = vld [vmem:[#allocation2 + $0x50c] ss:$16 sps:$4 sm:$0xff]   ;;  %v3877_v51 = vld [vmem:[#allocation2 + $0x308] ss:$16 sps:$4 sm:$0xff]  }
 0x129   :  { %2607 = vmatprep.subr.bf16.mxu0 %v3807_v38  ;;  %2648 = vmatprep.subr.bf16.mxu1 %v3810_v39  ;;  %v3888_v38 = vld [vmem:[#allocation2 + $0x8ec] ss:$16 sps:$4 sm:$0xff]   ;;  %v3883_v39 = vld [vmem:[#allocation2 + $0x6e8] ss:$16 sps:$4 sm:$0xff]  }
 0x12c   :  { %2608 = vmatpush1.bf16.msra.mxu0 %v3805_v40  ;;  %2649 = vmatpush1.bf16.msra.mxu1 %v3808_v41  ;;  %v3886_v40 = vld [vmem:[#allocation2 + $0x8e8] ss:$16 sps:$4 sm:$0xff]   ;;  %v3891_v41 = vld [vmem:[#allocation2 + $0x6cc] ss:$16 sps:$4 sm:$0xff]  }
 0x12d   :  { %2609 = vmatprep.subr.bf16.mxu0 %v3813_v26  ;;  %2650 = vmatprep.subr.bf16.mxu1 %v3816_v15  ;;  %v3894_v26 = vld [vmem:[#allocation2 + $0x8cc] ss:$16 sps:$4 sm:$0xff]  }
 0x130   :  { %2610 = vmatpush1.bf16.msra.mxu0 %v3811_v42  ;;  %2651 = vmatpush1.bf16.msra.mxu1 %v3814_v43 }
 0x131   :  { %2611 = vmatprep.subr.bf16.mxu0 %v3819_v44  ;;  %2652 = vmatprep.subr.bf16.mxu1 %v3822_v45  ;;  %v3889_v44 = vld [vmem:[#allocation2 + $0x6c8] ss:$16 sps:$4 sm:$0xff]  }
 0x132   :  { %v3892_v45 = vld [vmem:[#allocation2 + $0x8c8] ss:$16 sps:$4 sm:$0xff]  }
 0x134   :  { %2612 = vmatpush1.bf16.msra.mxu0 %v3817_v46  ;;  %2653 = vmatpush1.bf16.msra.mxu1 %v3820_v47 }
 0x135   :  { %2613 = vmatprep.subr.bf16.mxu0 %v3825_v48  ;;  %2654 = vmatprep.subr.bf16.mxu1 %v3828_v49  ;;  %v3897_v48 = vld [vmem:[#allocation2 + $0x6ac] ss:$16 sps:$4 sm:$0xff]  }
 0x136   :  { %v3900_v49 = vld [vmem:[#allocation2 + $0x8ac] ss:$16 sps:$4 sm:$0xff]  }
 0x138   :  { %2614 = vmatpush1.bf16.msra.mxu0 %v3823_v50  ;;  %2655 = vmatpush1.bf16.msra.mxu1 %v3826_v53 }
 0x139   :  { %2615 = vmatprep.subr.bf16.mxu0 %v3831_v54  ;;  %2656 = vmatprep.subr.bf16.mxu1 %v3834_v55  ;;  %v3895_v54 = vld [vmem:[#allocation2 + $0x6a8] ss:$16 sps:$4 sm:$0xff]  }
 0x13a   :  { %v3898_v55 = vld [vmem:[#allocation2 + $0x8a8] ss:$16 sps:$4 sm:$0xff]  }
 0x13c   :  { %2616 = vmatpush1.bf16.msra.mxu0 %v3829_v56  ;;  %2657 = vmatpush1.bf16.msra.mxu1 %v3832_v57 }
 0x13d   :  { %2617 = vmatprep.subr.bf16.mxu0 %v3837_v58  ;;  %2658 = vmatprep.subr.bf16.mxu1 %v3840_v59  ;;  %v3903_v58 = vld [vmem:[#allocation2 + $0x68c] ss:$16 sps:$4 sm:$0xff]  }
 0x13e   :  { %v3906_v59 = vld [vmem:[#allocation2 + $0x88c] ss:$16 sps:$4 sm:$0xff]  }
 0x140   :  { %2618 = vmatpush2.bf16.msra.mxu0 %v3835_v60  ;;  %2659 = vmatpush2.bf16.msra.mxu1 %v3838_v61  ;;  %v3912_v60 = vld [vmem:[#allocation2 + $0x86c] ss:$16 sps:$4 sm:$0xff]   ;;  %v3907_v61 = vld [vmem:[#allocation2 + $0x668] ss:$16 sps:$4 sm:$0xff]  }
 0x141   :  { %2619 = vmatprep.subr.bf16.mxu0 %v3843_v62  ;;  %2660 = vmatprep.subr.bf16.mxu1 %v3846_v0  ;;  %v3910_v62 = vld [vmem:[#allocation2 + $0x868] ss:$16 sps:$4 sm:$0xff]   ;;  %v3915_v0 = vld [vmem:[#allocation2 + $0x64c] ss:$16 sps:$4 sm:$0xff]  }
 0x144   :  { %2620 = vmatpush2.bf16.msra.mxu0 %v3841_v1  ;;  %2661 = vmatpush2.bf16.msra.mxu1 %v3844_v2  ;;  %v3918_v1 = vld [vmem:[#allocation2 + $0x84c] ss:$16 sps:$4 sm:$0xff]   ;;  %v3913_v2 = vld [vmem:[#allocation2 + $0x648] ss:$16 sps:$4 sm:$0xff]  }
 0x145   :  { %2621 = vmatprep.subr.bf16.mxu0 %v3849_v3  ;;  %2662 = vmatprep.subr.bf16.mxu1 %v3852_v8  ;;  %v3916_v3 = vld [vmem:[#allocation2 + $0x848] ss:$16 sps:$4 sm:$0xff]   ;;  %v3921_v8 = vld [vmem:[#allocation2 + $0x62c] ss:$16 sps:$4 sm:$0xff]  }
 0x148   :  { %2622 = vmatpush2.bf16.msra.mxu0 %v3847_v9  ;;  %2663 = vmatpush2.bf16.msra.mxu1 %v3850_v12  ;;  %v3924_v9 = vld [vmem:[#allocation2 + $0x82c] ss:$16 sps:$4 sm:$0xff]   ;;  %v3919_v12 = vld [vmem:[#allocation2 + $0x628] ss:$16 sps:$4 sm:$0xff]  }
 0x149   :  { %2623 = vmatprep.subr.bf16.mxu0 %v3855_v13  ;;  %2664 = vmatprep.subr.bf16.mxu1 %v3858_v6  ;;  %v3922_v13 = vld [vmem:[#allocation2 + $0x828] ss:$16 sps:$4 sm:$0xff]   ;;  %v3927_v6 = vld [vmem:[#allocation2 + $0x60c] ss:$16 sps:$4 sm:$0xff]  }
 0x14c   :  { %2624 = vmatpush2.bf16.msra.mxu0 %v3853_v16  ;;  %2665 = vmatpush2.bf16.msra.mxu1 %v3856_v11  ;;  %v3930_v16 = vld [vmem:[#allocation2 + $0x80c] ss:$16 sps:$4 sm:$0xff]   ;;  %v3925_v11 = vld [vmem:[#allocation2 + $0x608] ss:$16 sps:$4 sm:$0xff]  }
 0x14d   :  { %2625 = vmatprep.subr.bf16.mxu0 %v3861_v17  ;;  %2666 = vmatprep.subr.bf16.mxu1 %v3864_v19  ;;  %v3928_v17 = vld [vmem:[#allocation2 + $0x808] ss:$16 sps:$4 sm:$0xff]   ;;  %v3933_v19 = vld [vmem:[#allocation2 + $0x7ec] ss:$16 sps:$4 sm:$0xff]  }
 0x150   :  { %2626 = vmatpush2.bf16.msra.mxu0 %v3859_v10  ;;  %2667 = vmatpush2.bf16.msra.mxu1 %v3862_v21  ;;  %v3936_v10 = vld [vmem:[#allocation2 + $0x9ec] ss:$16 sps:$4 sm:$0xff]   ;;  %v3931_v21 = vld [vmem:[#allocation2 + $0x7e8] ss:$16 sps:$4 sm:$0xff]  }
 0x151   :  { %2627 = vmatprep.subr.bf16.mxu0 %v3867_v22  ;;  %2668 = vmatprep.subr.bf16.mxu1 %v3870_v23  ;;  %v3934_v22 = vld [vmem:[#allocation2 + $0x9e8] ss:$16 sps:$4 sm:$0xff]   ;;  %v3939_v23 = vld [vmem:[#allocation2 + $0x7cc] ss:$16 sps:$4 sm:$0xff]  }
 0x154   :  { %2628 = vmatpush2.bf16.msra.mxu0 %v3865_v25  ;;  %2669 = vmatpush2.bf16.msra.mxu1 %v3868_v24  ;;  %v3942_v25 = vld [vmem:[#allocation2 + $0x9cc] ss:$16 sps:$4 sm:$0xff]   ;;  %v3937_v24 = vld [vmem:[#allocation2 + $0x7c8] ss:$16 sps:$4 sm:$0xff]  }
 0x155   :  { %2629 = vmatprep.subr.bf16.mxu0 %v3873_v63  ;;  %2670 = vmatprep.subr.bf16.mxu1 %v3876_v31  ;;  %v3940_v63 = vld [vmem:[#allocation2 + $0x9c8] ss:$16 sps:$4 sm:$0xff]   ;;  %v3945_v31 = vld [vmem:[#allocation2 + $0x7ac] ss:$16 sps:$4 sm:$0xff]  }
 0x158   :  { %2630 = vmatpush2.bf16.msra.mxu0 %v3871_v32  ;;  %2671 = vmatpush2.bf16.msra.mxu1 %v3874_v33  ;;  %v3948_v32 = vld [vmem:[#allocation2 + $0x9ac] ss:$16 sps:$4 sm:$0xff]   ;;  %v3943_v33 = vld [vmem:[#allocation2 + $0x7a8] ss:$16 sps:$4 sm:$0xff]  }
 0x159   :  { %2631 = vmatprep.subr.bf16.mxu0 %v3879_v34  ;;  %2672 = vmatprep.subr.bf16.mxu1 %v3882_v35  ;;  %v3946_v34 = vld [vmem:[#allocation2 + $0x9a8] ss:$16 sps:$4 sm:$0xff]   ;;  %v3951_v35 = vld [vmem:[#allocation2 + $0x78c] ss:$16 sps:$4 sm:$0xff]  }
 0x15c   :  { %2632 = vmatpush2.bf16.msra.mxu0 %v3877_v51  ;;  %2673 = vmatpush2.bf16.msra.mxu1 %v3880_v36  ;;  %v3954_v51 = vld [vmem:[#allocation2 + $0x98c] ss:$16 sps:$4 sm:$0xff]   ;;  %v3949_v36 = vld [vmem:[#allocation2 + $0x788] ss:$16 sps:$4 sm:$0xff]  }
 0x15d   :  { %2683 = vmatprep.subr.bf16.mxu0 %v3885_v37  ;;  %2724 = vmatprep.subr.bf16.mxu1 %v3888_v38  ;;  %v3952_v37 = vld [vmem:[#allocation2 + $0x988] ss:$16 sps:$4 sm:$0xff]   ;;  %v3957_v38 = vld [vmem:[#allocation2 + $0x76c] ss:$16 sps:$4 sm:$0xff]  }
 0x15f   :  { %v2389_v15 = vpop.f32.mrf.mxu0  ;;  %v2430_v42 = vpop.f32.mrf.mxu1  ;;  %2634 = vmatmul.mubr.bf16.vlgmr.msra.gmra.mxu0 %v4184_v52  ;;  %2675 = vmatmul.mubr.bf16.vlgmr.msra.gmra.mxu1 %v4216_v4 }
 0x160   :  { %v2390_v43 = vadd.f32 %v2389_v15, %v4232_v27  ;;  %2684 = vmatpush1.bf16.msra.mxu0 %v3883_v39  ;;  %2725 = vmatpush1.bf16.msra.mxu1 %v3886_v40  ;;  %v3960_v39 = vld [vmem:[#allocation2 + $0x96c] ss:$16 sps:$4 sm:$0xff]   ;;  %v3955_v40 = vld [vmem:[#allocation2 + $0x768] ss:$16 sps:$4 sm:$0xff]  }
 0x161   :  { %v2391_v46 = vpop.f32.mrf.mxu0  ;;  %v2432_v47 = vpop.f32.mrf.mxu1  ;;  %2685 = vmatprep.subr.bf16.mxu0 %v3891_v41  ;;  %2726 = vmatprep.subr.bf16.mxu1 %v3894_v26  ;;  %v3958_v41 = vld [vmem:[#allocation2 + $0x968] ss:$16 sps:$4 sm:$0xff]   ;;  %v3963_v26 = vld [vmem:[#allocation2 + $0x74c] ss:$16 sps:$4 sm:$0xff]  }
 0x162   :  { %v4247_v50 = vadd.f32 %v2430_v42, %v2390_v43  ;;  %v2392_v53 = vadd.f32 %v2391_v46, %v4238_v29  ;;  %2715 = vmatprep.mubr.bf16.mxu0 %v4204_v18  ;;  %2756 = vmatprep.mubr.bf16.mxu1 %v4222_v14  ;;  %v3901_v29 = vld [vmem:[#allocation2 + $0x688] ss:$16 sps:$4 sm:$0xff]   ;;  %v3909_v14 = vld [vmem:[#allocation2 + $0x66c] ss:$16 sps:$4 sm:$0xff]  }
 0x163   :  { %v2393_v52 = vpop.f32.mrf.mxu0  ;;  %v2434_v4 = vpop.f32.mrf.mxu1  ;;  %v3904_v18 = vld [vmem:[#allocation2 + $0x888] ss:$16 sps:$4 sm:$0xff]   ;;  %v3966_v15 = vld [vmem:[#allocation2 + $0x94c] ss:$16 sps:$4 sm:$0xff]  }
 0x164   :  { %v4252_v27 = vadd.f32 %v2432_v47, %v2392_v53  ;;  %2686 = vmatpush1.bf16.msra.mxu0 %v3889_v44  ;;  %2727 = vmatpush1.bf16.msra.mxu1 %v3892_v45  ;;  %v3961_v42 = vld [vmem:[#allocation2 + $0x748] ss:$16 sps:$4 sm:$0xff]   ;;  %v3969_v44 = vld [vmem:[#allocation2 + $0x72c] ss:$16 sps:$4 sm:$0xff]  }
 0x165   :  { %v2394_v56 = vpop.f32.mrf.mxu0  ;;  %v2435_v57 = vpop.f32.mrf.mxu1  ;;  %2687 = vmatprep.subr.bf16.mxu0 %v3897_v48  ;;  %2728 = vmatprep.subr.bf16.mxu1 %v3900_v49  ;;  %v3964_v43 = vld [vmem:[#allocation2 + $0x948] ss:$16 sps:$4 sm:$0xff]   ;;  %v3972_v45 = vld [vmem:[#allocation2 + $0x92c] ss:$16 sps:$4 sm:$0xff]  }
 0x166   :  { %v3967_v46 = vld [vmem:[#allocation2 + $0x728] ss:$16 sps:$4 sm:$0xff]   ;;  %v3975_v48 = vld [vmem:[#allocation2 + $0x70c] ss:$16 sps:$4 sm:$0xff]  }
 0x167   :  { %v3970_v47 = vld [vmem:[#allocation2 + $0x928] ss:$16 sps:$4 sm:$0xff]   ;;  %v3978_v49 = vld [vmem:[#allocation2 + $0x90c] ss:$16 sps:$4 sm:$0xff]  }
 0x168   :  { %2688 = vmatpush1.bf16.msra.mxu0 %v3895_v54  ;;  %2729 = vmatpush1.bf16.msra.mxu1 %v3898_v55  ;;  %v3973_v53 = vld [vmem:[#allocation2 + $0x708] ss:$16 sps:$4 sm:$0xff]   ;;  %v2826_v4 = vld [vmem:[#allocation7 + $0xf8] sm:$0xff] }
 0x169   :  { %2689 = vmatprep.subr.bf16.mxu0 %v3903_v58  ;;  %2730 = vmatprep.subr.bf16.mxu1 %v3906_v59  ;;  %v3976_v52 = vld [vmem:[#allocation2 + $0x908] ss:$16 sps:$4 sm:$0xff]   ;;  %v2810_v54 = vld [vmem:[#allocation7 + $0x78] sm:$0xff] }
 0x16a   :  { %v2825_v55 = vld [vmem:[#allocation7 + $0xf0] sm:$0xff] }
 0x16b   :  { %v2809_v58 = vld [vmem:[#allocation7 + $0x70] sm:$0xff] }
 0x16c   :  { %2690 = vmatpush1.bf16.msra.mxu0 %v3901_v29  ;;  %2731 = vmatpush1.bf16.msra.mxu1 %v3904_v18  ;;  %v2824_v29 = vld [vmem:[#allocation7 + $0xe8] sm:$0xff] }
 0x16d   :  { %2691 = vmatprep.subr.bf16.mxu0 %v3909_v14  ;;  %2732 = vmatprep.subr.bf16.mxu1 %v3912_v60  ;;  %v2808_v60 = vld [vmem:[#allocation7 + $0x68] sm:$0xff] }
 0x170   :  { %2692 = vmatpush1.bf16.msra.mxu0 %v3907_v61  ;;  %2733 = vmatpush1.bf16.msra.mxu1 %v3910_v62  ;;  %v2823_v62 = vld [vmem:[#allocation7 + $0xe0] sm:$0xff] }
 0x171   :  { %2693 = vmatprep.subr.bf16.mxu0 %v3915_v0  ;;  %2734 = vmatprep.subr.bf16.mxu1 %v3918_v1 }
 0x174   :  { %2694 = vmatpush1.bf16.msra.mxu0 %v3913_v2  ;;  %2735 = vmatpush1.bf16.msra.mxu1 %v3916_v3  ;;  %v2806_v2 = vld [vmem:[#allocation7 + $0x58] sm:$0xff] }
 0x175   :  { %2695 = vmatprep.subr.bf16.mxu0 %v3921_v8  ;;  %2736 = vmatprep.subr.bf16.mxu1 %v3924_v9  ;;  %v2858_v8 = vld [vmem:[#allocation7 + $0x1f8] sm:$0xff] }
 0x176   :  { %v2842_v9 = vld [vmem:[#allocation7 + $0x178] sm:$0xff] }
 0x178   :  { %2696 = vmatpush1.bf16.msra.mxu0 %v3919_v12  ;;  %2737 = vmatpush1.bf16.msra.mxu1 %v3922_v13  ;;  %v2857_v12 = vld [vmem:[#allocation7 + $0x1f0] sm:$0xff] }
 0x179   :  { %2697 = vmatprep.subr.bf16.mxu0 %v3927_v6  ;;  %2738 = vmatprep.subr.bf16.mxu1 %v3930_v16  ;;  %v2821_v13 = vld [vmem:[#allocation7 + $0xd0] sm:$0xff] }
 0x17a   :  { %v2841_v6 = vld [vmem:[#allocation7 + $0x170] sm:$0xff] }
 0x17b   :  { %v2805_v16 = vld [vmem:[#allocation7 + $0x50] sm:$0xff] }
 0x17c   :  { %2698 = vmatpush1.bf16.msra.mxu0 %v3925_v11  ;;  %2739 = vmatpush1.bf16.msra.mxu1 %v3928_v17  ;;  %v2856_v11 = vld [vmem:[#allocation7 + $0x1e8] sm:$0xff] }
 0x17d   :  { %2699 = vmatprep.subr.bf16.mxu0 %v3933_v19  ;;  %2740 = vmatprep.subr.bf16.mxu1 %v3936_v10  ;;  %v2820_v17 = vld [vmem:[#allocation7 + $0xc8] sm:$0xff] }
 0x17e   :  { %v2840_v19 = vld [vmem:[#allocation7 + $0x168] sm:$0xff] }
 0x17f   :  { %v2804_v10 = vld [vmem:[#allocation7 + $0x48] sm:$0xff] }
 0x180   :  { %2700 = vmatpush2.bf16.msra.mxu0 %v3931_v21  ;;  %2741 = vmatpush2.bf16.msra.mxu1 %v3934_v22  ;;  %v2855_v21 = vld [vmem:[#allocation7 + $0x1e0] sm:$0xff] }
 0x181   :  { %2701 = vmatprep.subr.bf16.mxu0 %v3939_v23  ;;  %2742 = vmatprep.subr.bf16.mxu1 %v3942_v25  ;;  %v2819_v22 = vld [vmem:[#allocation7 + $0xc0] sm:$0xff] }
 0x182   :  { %v2839_v23 = vld [vmem:[#allocation7 + $0x160] sm:$0xff] }
 0x183   :  { %v2803_v25 = vld [vmem:[#allocation7 + $0x40] sm:$0xff] }
 0x184   :  { %2702 = vmatpush2.bf16.msra.mxu0 %v3937_v24  ;;  %2743 = vmatpush2.bf16.msra.mxu1 %v3940_v63  ;;  %v2854_v24 = vld [vmem:[#allocation7 + $0x1d8] sm:$0xff] }
 0x185   :  { %2703 = vmatprep.subr.bf16.mxu0 %v3945_v31  ;;  %2744 = vmatprep.subr.bf16.mxu1 %v3948_v32  ;;  %v2818_v63 = vld [vmem:[#allocation7 + $0xb8] sm:$0xff] }
 0x186   :  { %v2838_v31 = vld [vmem:[#allocation7 + $0x158] sm:$0xff] }
 0x187   :  { %v2802_v32 = vld [vmem:[#allocation7 + $0x38] sm:$0xff] }
 0x188   :  { %2704 = vmatpush2.bf16.msra.mxu0 %v3943_v33  ;;  %2745 = vmatpush2.bf16.msra.mxu1 %v3946_v34  ;;  %v2853_v33 = vld [vmem:[#allocation7 + $0x1d0] sm:$0xff] }
 0x189   :  { %2705 = vmatprep.subr.bf16.mxu0 %v3951_v35  ;;  %2746 = vmatprep.subr.bf16.mxu1 %v3954_v51  ;;  %v2817_v34 = vld [vmem:[#allocation7 + $0xb0] sm:$0xff] }
 0x18a   :  { %v2837_v35 = vld [vmem:[#allocation7 + $0x150] sm:$0xff] }
 0x18b   :  { %v2801_v51 = vld [vmem:[#allocation7 + $0x30] sm:$0xff] }
 0x18c   :  { %2706 = vmatpush2.bf16.msra.mxu0 %v3949_v36  ;;  %2747 = vmatpush2.bf16.msra.mxu1 %v3952_v37  ;;  %v2852_v36 = vld [vmem:[#allocation7 + $0x1c8] sm:$0xff] }
 0x18d   :  { %2707 = vmatprep.subr.bf16.mxu0 %v3957_v38  ;;  %2748 = vmatprep.subr.bf16.mxu1 %v3960_v39  ;;  %v2816_v37 = vld [vmem:[#allocation7 + $0xa8] sm:$0xff] }
 0x18e   :  { %v2836_v38 = vld [vmem:[#allocation7 + $0x148] sm:$0xff] }
 0x18f   :  { %v2800_v39 = vld [vmem:[#allocation7 + $0x28] sm:$0xff] }
 0x190   :  { %2708 = vmatpush2.bf16.msra.mxu0 %v3955_v40  ;;  %2749 = vmatpush2.bf16.msra.mxu1 %v3958_v41  ;;  %v2851_v40 = vld [vmem:[#allocation7 + $0x1c0] sm:$0xff] }
 0x191   :  { %2709 = vmatprep.subr.bf16.mxu0 %v3963_v26  ;;  %2750 = vmatprep.subr.bf16.mxu1 %v3966_v15  ;;  %v2815_v41 = vld [vmem:[#allocation7 + $0xa0] sm:$0xff] }
 0x192   :  { %v2835_v26 = vld [vmem:[#allocation7 + $0x140] sm:$0xff] }
 0x193   :  { %v2799_v15 = vld [vmem:[#allocation7 + $0x20] sm:$0xff] }
 0x194   :  { %2710 = vmatpush2.bf16.msra.mxu0 %v3961_v42  ;;  %2751 = vmatpush2.bf16.msra.mxu1 %v3964_v43  ;;  %v2850_v42 = vld [vmem:[#allocation7 + $0x1b8] sm:$0xff] }
 0x195   :  { %2711 = vmatprep.subr.bf16.mxu0 %v3969_v44  ;;  %2752 = vmatprep.subr.bf16.mxu1 %v3972_v45  ;;  %v2814_v43 = vld [vmem:[#allocation7 + $0x98] sm:$0xff] }
 0x196   :  { %v2834_v44 = vld [vmem:[#allocation7 + $0x138] sm:$0xff] }
 0x197   :  { %v2798_v45 = vld [vmem:[#allocation7 + $0x18] sm:$0xff] }
 0x198   :  { %2712 = vmatpush2.bf16.msra.mxu0 %v3967_v46  ;;  %2753 = vmatpush2.bf16.msra.mxu1 %v3970_v47  ;;  %v2849_v46 = vld [vmem:[#allocation7 + $0x1b0] sm:$0xff] }
 0x199   :  { %2713 = vmatprep.subr.bf16.mxu0 %v3975_v48  ;;  %2754 = vmatprep.subr.bf16.mxu1 %v3978_v49  ;;  %v2813_v47 = vld [vmem:[#allocation7 + $0x90] sm:$0xff] }
 0x19a   :  { %v2833_v48 = vld [vmem:[#allocation7 + $0x130] sm:$0xff] }
 0x19b   :  { %v2797_v49 = vld [vmem:[#allocation7 + $0x10] sm:$0xff] }
 0x19c   :  { %2714 = vmatpush2.bf16.msra.mxu0 %v3973_v53  ;;  %2755 = vmatpush2.bf16.msra.mxu1 %v3976_v52  ;;  %v2812_v53 = vld [vmem:[#allocation7 + $0x88] sm:$0xff] }
 0x19d   :  { %3368 = vmatprep.subr.mxu0 %v2826_v4  ;;  %3403 = vmatprep.subr.mxu1 %v2858_v8  ;;  %v2796_v52 = vld [vmem:[#allocation7 + $0x8] sm:$0xff]  ;;  %v2811_v4 = vld [vmem:[#allocation7 + $0x80] sm:$0xff]  ;;  %v2846_v8 = vld [vmem:[#allocation7 + $0x198] sm:$0xff] }
 0x19f   :  { %v2471_v56 = vpop.f32.mrf.mxu0  ;;  %v2512_v57 = vpop.f32.mrf.mxu1  ;;  %2716 = vmatmul.mubr.bf16.vlgmr.msra.gmra.mxu0 %v4220_v7  ;;  %2757 = vmatmul.mubr.bf16.vlgmr.msra.gmra.mxu1 %v4230_v20  ;;  %v2807_v7 = vld [vmem:[#allocation7 + $0x60] sm:$0xff]  ;;  %v2822_v20 = vld [vmem:[#allocation7 + $0xd8] sm:$0xff] }
 0x1a0   :  { %v2472_v59 = vadd.f32 %v2471_v56, %v4247_v50  ;;  %3369 = vmatpush3.msra.mxu0 %v2810_v54  ;;  %3404 = vmatpush3.msra.mxu1 %v2842_v9  ;;  %v2795_v54 = vld [vmem:[#allocation7] sm:$0xff] }
 0x1a1   :  { %v4257_v18 = vpop.f32.mrf.mxu0  ;;  %v4259_v14 = vpop.f32.mrf.mxu1  ;;  %3370 = vmatprep.subr.mxu0 %v2825_v55  ;;  %3405 = vmatprep.subr.mxu1 %v2857_v12  ;;  %v2769_v55 = vsub.s32 0, %v4154_v5 }
 0x1a2   :  { %v4261_v61 = vadd.f32 %v2512_v57, %v2472_v59  ;;  %3371 = vmatpush3.msra.mxu0 %v2809_v58  ;;  %3406 = vmatpush3.msra.mxu1 %v2841_v6  ;;  %v2474_v56 = vadd.f32 %v4257_v18, %v4252_v27  ;;  %v4266_v57 = vld [vmem:[#allocation6] sm:$0xf]  ;;  %v2773_v58 = vsub.s32 1, %v4154_v5  ;;  %v2848_v59 = vld [vmem:[#allocation7 + $0x1a8] sm:$0xff] }
 0x1a3   :  { %v2475_v0 = vpop.f32.mrf.mxu0  ;;  %v2516_v1 = vpop.f32.mrf.mxu1  ;;  %3372 = vmatprep.subr.mxu0 %v2824_v29  ;;  %3407 = vmatprep.subr.mxu1 %v2856_v11  ;;  %v2830_v6 = vld [vmem:[#allocation7 + $0x118] sm:$0xff] }
 0x1a4   :  { %3373 = vmatpush3.msra.mxu0 %v2808_v60  ;;  %3408 = vmatpush3.msra.mxu1 %v2840_v19  ;;  %v2770_v60 = vrot.slane %v4266_v57, %v2769_v55  ;;  %v2832_v0 = vld [vmem:[#allocation7 + $0x128] sm:$0xff]  ;;  %v2515_v1 = vadd.f32 %v4259_v14, %v2474_v56  ;;  %v2845_v14 = vld [vmem:[#allocation7 + $0x190] sm:$0xff] }
 0x1a5   :  { %v2476_v50 = vpop.f32.mrf.mxu0  ;;  %v2517_v3 = vpop.f32.mrf.mxu1  ;;  %3374 = vmatprep.subr.mxu0 %v2823_v62  ;;  %3409 = vmatprep.subr.mxu1 %v2855_v21 }
 0x1a6   :  { %3375 = vmatpush3.msra.mxu0 %v2807_v7  ;;  %3410 = vmatpush3.msra.mxu1 %v2839_v23  ;;  %v2831_v50 = vld [vmem:[#allocation7 + $0x120] sm:$0xff] }
 0x1a7   :  { %3376 = vmatprep.subr.mxu0 %v2822_v20  ;;  %3411 = vmatprep.subr.mxu1 %v2854_v24  ;;  %v2774_v20 = vrot.slane %v4266_v57, %v2773_v58  ;;  %v2843_v23 = vld [vmem:[#allocation7 + $0x180] sm:$0xff] }
 0x1a8   :  { %3377 = vmatpush3.msra.mxu0 %v2806_v2  ;;  %3412 = vmatpush3.msra.mxu1 %v2838_v31  ;;  %v2847_v2 = vld [vmem:[#allocation7 + $0x1a0] sm:$0xff] }
 0x1a9   :  { %3378 = vmatprep.subr.mxu0 %v2821_v13  ;;  %3413 = vmatprep.subr.mxu1 %v2853_v33 }
 0x1aa   :  { %3379 = vmatpush3.msra.mxu0 %v2805_v16  ;;  %3414 = vmatpush3.msra.mxu1 %v2837_v35 }
 0x1ab   :  { %3380 = vmatprep.subr.mxu0 %v2820_v17  ;;  %3415 = vmatprep.subr.mxu1 %v2852_v36  ;;  %v2829_v17 = vld [vmem:[#allocation7 + $0x110] sm:$0xff] }
 0x1ac   :  { %3381 = vmatpush3.msra.mxu0 %v2804_v10  ;;  %3416 = vmatpush3.msra.mxu1 %v2836_v38  ;;  %v2844_v10 = vld [vmem:[#allocation7 + $0x188] sm:$0xff] }
 0x1ad   :  { %3382 = vmatprep.subr.mxu0 %v2819_v22  ;;  %3417 = vmatprep.subr.mxu1 %v2851_v40  ;;  %v2828_v22 = vld [vmem:[#allocation7 + $0x108] sm:$0xff] }
 0x1ae   :  { %3383 = vmatpush3.msra.mxu0 %v2803_v25  ;;  %3418 = vmatpush3.msra.mxu1 %v2835_v26  ;;  %v2827_v25 = vld [vmem:[#allocation7 + $0x100] sm:$0xff]  ;;  %v2781_v26 = vsub.s32 3, %v4154_v5 }
 0x1af   :  { %3384 = vmatprep.subr.mxu0 %v2818_v63  ;;  %3419 = vmatprep.subr.mxu1 %v2850_v42 }
 0x1b0   :  { %3385 = vmatpush3.msra.mxu0 %v2802_v32  ;;  %3420 = vmatpush3.msra.mxu1 %v2834_v44 }
 0x1b1   :  { %3386 = vmatprep.subr.mxu0 %v2817_v34  ;;  %3421 = vmatprep.subr.mxu1 %v2849_v46 }
 0x1b2   :  { %3387 = vmatpush3.msra.mxu0 %v2801_v51  ;;  %3422 = vmatpush3.msra.mxu1 %v2833_v48 }
 0x1b3   :  { %3388 = vmatprep.subr.mxu0 %v2816_v37  ;;  %3423 = vmatprep.subr.mxu1 %v2848_v59 }
 0x1b4   :  { %3389 = vmatpush3.msra.mxu0 %v2800_v39  ;;  %3424 = vmatpush3.msra.mxu1 %v2832_v0 }
 0x1b5   :  { %3390 = vmatprep.subr.mxu0 %v2815_v41  ;;  %3425 = vmatprep.subr.mxu1 %v2847_v2  ;;  %v2777_v41 = vsub.s32 2, %v4154_v5 }
 0x1b6   :  { %3391 = vmatpush3.msra.mxu0 %v2799_v15  ;;  %3426 = vmatpush3.msra.mxu1 %v2831_v50 }
 0x1b7   :  { %3392 = vmatprep.subr.mxu0 %v2814_v43  ;;  %3427 = vmatprep.subr.mxu1 %v2846_v8  ;;  %v2778_v44 = vrot.slane %v4266_v57, %v2777_v41 }
 0x1b8   :  { %3393 = vmatpush3.msra.mxu0 %v2798_v45  ;;  %3428 = vmatpush3.msra.mxu1 %v2830_v6 }
 0x1b9   :  { %3394 = vmatprep.subr.mxu0 %v2813_v47  ;;  %3429 = vmatprep.subr.mxu1 %v2845_v14 }
 0x1ba   :  { %3395 = vmatpush3.msra.mxu0 %v2797_v49  ;;  %3430 = vmatpush3.msra.mxu1 %v2829_v17  ;;  %v2782_v49 = vrot.slane %v4266_v57, %v2781_v26 }
 0x1bb   :  { %3396 = vmatprep.subr.mxu0 %v2812_v53  ;;  %3431 = vmatprep.subr.mxu1 %v2844_v10 }
 0x1bc   :  { %3397 = vmatpush3.msra.mxu0 %v2796_v52  ;;  %3432 = vmatpush3.msra.mxu1 %v2828_v22 }
 0x1bd   :  { %3398 = vmatprep.subr.mxu0 %v2811_v4  ;;  %3433 = vmatprep.subr.mxu1 %v2843_v23 }
 0x1be   :  { %3399 = vmatpush3.msra.mxu0 %v2795_v54  ;;  %3434 = vmatpush3.msra.mxu1 %v2827_v25 }
 0x1df   :  { %v2553_v29 = vpop.f32.mrf.mxu0  ;;  %v2594_v62 = vpop.f32.mrf.mxu1 }
 0x1e0   :  { %v2554_v7 = vadd.f32 %v2553_v29, %v4261_v61  ;;  %v2595_v24 = vadd.f32 %v2594_v62, %v4234_v28  ;;  %v3367_v62 = vld [vmem:[#allocation9] ss:$0 sm:$0xff] }
 0x1e1   :  { %v2555_v27 = vpop.f32.mrf.mxu0  ;;  %v2596_v18 = vpop.f32.mrf.mxu1 }
 0x1e2   :  { %v2556_v3 = vadd.f32 %v2555_v27, %v2515_v1  ;;  %v2787_v9 = vadd.f32 %v2770_v60, %v2554_v7  ;;  %v2597_v39 = vadd.f32 %v2596_v18, %v4240_v30 }
 0x1e3   :  { %v2557_v12 = vpop.f32.mrf.mxu0  ;;  %v2598_v13 = vpop.f32.mrf.mxu1 }
 0x1e4   :  { %v2788_v16 = vadd.f32 %v2774_v20, %v2556_v3  ;;  %v2791_v21 = vmax.f32 %v2787_v9, 0.0 }
 0x1e5   :  { %v2558_v61 = vpop.f32.mrf.mxu0  ;;  %v2599_v11 = vpop.f32.mrf.mxu1 }
 0x1e6   :  { %v2792_v19 = vmax.f32 %v2788_v16, 0.0 }
 0x1e8   :  { %2930 = vmatprep.mubr.f32.mxu0 %v2792_v19 }
 0x1e9   :  { %2931 = vmatmul.mubr.f32.vlgmr.msra.gmra.mxu0 %v2791_v21 }
 0x21f   :  { %v2635_v63 = vpop.f32.mrf.mxu0  ;;  %v2676_v31 = vpop.f32.mrf.mxu1 }
 0x220   :  { %v2636_v32 = vadd.f32 %v2635_v63, %v2595_v24 }
 0x221   :  { %v2637_v33 = vpop.f32.mrf.mxu0  ;;  %v2678_v34 = vpop.f32.mrf.mxu1 }
 0x222   :  { %v2677_v35 = vadd.f32 %v2676_v31, %v2636_v32  ;;  %v2638_v40 = vadd.f32 %v2637_v33, %v2597_v39 }
 0x223   :  { %v2639_v51 = vpop.f32.mrf.mxu0  ;;  %v2680_v36 = vpop.f32.mrf.mxu1 }
 0x224   :  { %v2679_v28 = vadd.f32 %v2678_v34, %v2638_v40 }
 0x225   :  { %v2640_v37 = vpop.f32.mrf.mxu0  ;;  %v2681_v38 = vpop.f32.mrf.mxu1 }
 0x25f   :  { %v2717_v15 = vpop.f32.mrf.mxu0  ;;  %v2758_v42 = vpop.f32.mrf.mxu1 }
 0x260   :  { %v2718_v43 = vadd.f32 %v2717_v15, %v2677_v35 }
 0x261   :  { %v2719_v45 = vpop.f32.mrf.mxu0  ;;  %v2760_v46 = vpop.f32.mrf.mxu1 }
 0x262   :  { %v2759_v47 = vadd.f32 %v2758_v42, %v2718_v43  ;;  %v2720_v48 = vadd.f32 %v2719_v45, %v2679_v28 }
 0x263   :  { %v2721_v53 = vpop.f32.mrf.mxu0  ;;  %v2762_v52 = vpop.f32.mrf.mxu1 }
 0x264   :  { %v2761_v30 = vadd.f32 %v2760_v46, %v2720_v48  ;;  %v2789_v4 = vadd.f32 %v2778_v44, %v2759_v47 }
 0x265   :  { %v2722_v54 = vpop.f32.mrf.mxu0  ;;  %v2763_v55 = vpop.f32.mrf.mxu1 }
 0x266   :  { %v2790_v56 = vadd.f32 %v2782_v49, %v2761_v30  ;;  %v2793_v58 = vmax.f32 %v2789_v4, 0.0 }
 0x268   :  { %v2794_v5 = vmax.f32 %v2790_v56, 0.0 }
 0x26a   :  { %3000 = vmatprep.mubr.f32.mxu1 %v2794_v5 }
 0x26b   :  { %3001 = vmatmul.mubr.f32.vlgmr.msra.gmra.mxu1 %v2793_v58 }
 0x2a9   :  { %v3400_v59 = vpop.f32.mrf.mxu0 }
 0x2ab   :  { %v3401_v29 = vpop.f32.mrf.mxu0 }
 0x2ac   :  { %v3402_v60 = vadd.f32 %v3401_v29, %v3400_v59 }
 0x2ae   :  { %v2933_v7 = vadd.f32 %v3402_v60, %v3367_v62 }
 0x32b   :  { %v3435_v0 = vpop.f32.mrf.mxu1 }
 0x32d   :  { %v3436_v1 = vpop.f32.mrf.mxu1 }
 0x32e   :  { %v3437_v20 = vadd.f32 %v3436_v1, %v3435_v0 }
 0x330   :  { %v3003_v57 = vadd.f32 %v3437_v20, %v2933_v7 }
 0x332   :  { %3006 = vst [vmem:[%s4289_s7] sm:$0x3] %v3003_v57 }
 0x333   :  { %3011 = vsyncpa [#allocation3], 1 }
 0x334   :  { %3012 = vsyncpa [#allocation5], 1 }
 0x335   :  { %3013 = vsyncpa [#allocation8], 1 }

</bundles_post_ra>
